<compile_context>
chip_gen: v7x
topology: tpu7x:2x2x1
jax: 0.10.0
libtpu: 0.0.40
codegen_flags: <defaults>
</compile_context>

<pallas_src>
import functools

import jax
import jax.numpy as jnp
from jax.experimental import pallas as pl
from jax.experimental.pallas import tpu as pltpu

LANES = 128


def _round_up(v, m):
    return (v + m - 1) // m * m


# ----------------------------------------------------------------------------
# Fused 2-layer GCN kernel (3 phases x row tiles)
# ----------------------------------------------------------------------------
def _gcn_fused_kernel(x_ref, w1_ref, b1_ref, w2_ref, b2_ref, a_ref,
                      o_ref, xw1_ref, hw2_ref, *a_scratch, tm, a_resident):
    p = pl.program_id(0)      # phase: 0 = X@W1, 1 = layer-1 agg, 2 = layer-2 agg
    i = pl.program_id(1)      # row tile of A_hat / output
    row0 = pl.multiple_of(i * tm, tm)

    if a_resident:
        a_vmem, a_sem = a_scratch

        # Single HBM read of A_hat, overlapped with all of phase 0's compute.
        @pl.when(jnp.logical_and(p == 0, i == 0))
        def _():
            pltpu.make_async_copy(a_ref, a_vmem, a_sem.at[0]).start()

        # A_hat is first consumed in phase 1; wait exactly once, right before.
        @pl.when(jnp.logical_and(p == 1, i == 0))
        def _():
            pltpu.make_async_copy(a_ref, a_vmem, a_sem.at[0]).wait()

        def a_tile():
            # Direct operand load for the MXU from the resident copy
            # (no extra materialized VMEM copy).
            return a_vmem[pl.ds(row0, tm), :]
    else:
        def a_tile():
            # Streaming fallback: a_ref is an auto-pipelined (tm, n_pad) block.
            return a_ref[...]

    @pl.when(p == 0)
    def _():
        # Phase 0: stream X row tiles, build X @ W1 in VMEM scratch.
        xw1_ref[pl.ds(row0, tm), :] = jnp.dot(
            x_ref[...], w1_ref[...],
            preferred_element_type=jnp.float32).astype(xw1_ref.dtype)

    @pl.when(p == 1)
    def _():
        # Phase 1: h = relu(A_tile @ (X W1) + b1), stash h @ W2 in scratch.
        h = jnp.dot(a_tile(), xw1_ref[...], preferred_element_type=jnp.float32)
        h = jnp.maximum(h + b1_ref[...], 0.0)
        # dropout(p=0.5, training=False) -> identity in eval mode.
        # TODO(synk): training-mode dropout would need pltpu.prng_* masking here.
        hw2_ref[pl.ds(row0, tm), :] = jnp.dot(
            h.astype(w2_ref.dtype), w2_ref[...],
            preferred_element_type=jnp.float32).astype(hw2_ref.dtype)

    @pl.when(p == 2)
    def _():
        # Phase 2: out = A_tile @ (H W2) + b2.
        out = jnp.dot(a_tile(), hw2_ref[...], preferred_element_type=jnp.float32)
        o_ref[...] = (out + b2_ref[...]).astype(o_ref.dtype)


# ----------------------------------------------------------------------------
# One-time (per graph) padding / casting — hoisted out of the forward path.
# ----------------------------------------------------------------------------
def prepare_gcn_inputs(x, a_hat, params, *, tm=None):
    w1, b1, w2, b2 = params
    n, f = x.shape
    hidden = w1.shape[1]
    n_classes = w2.shape[1]

    if tm is None:
        tm = min(1024, _round_up(n, LANES))     # row tile (multiple of 128)
    n_pad = _round_up(n, tm)
    f_pad = _round_up(f, LANES)
    h_pad = _round_up(hidden, LANES)
    c_pad = _round_up(n_classes, LANES)

    bf = jnp.bfloat16
    # Zero-pad (padded A_hat columns are zero, so padded rows of the
    # intermediates never contribute) and cast the big operands to bf16.
    x_p = jnp.zeros((n_pad, f_pad), bf).at[:n, :f].set(x.astype(bf))
    a_p = jnp.zeros((n_pad, n_pad), bf).at[:n, :n].set(a_hat.astype(bf))
    w1_p = jnp.zeros((f_pad, h_pad), bf).at[:f, :hidden].set(w1.astype(bf))
    w2_p = jnp.zeros((h_pad, c_pad), bf).at[:hidden, :n_classes].set(w2.astype(bf))
    b1_p = jnp.zeros((1, h_pad), jnp.float32).at[:, :hidden].set(
        b1.reshape(1, -1).astype(jnp.float32))
    b2_p = jnp.zeros((1, c_pad), jnp.float32).at[:, :n_classes].set(
        b2.reshape(1, -1).astype(jnp.float32))

    meta = dict(n=n, n_classes=n_classes, tm=tm)
    return (x_p, w1_p, b1_p, w2_p, b2_p, a_p), meta


# ----------------------------------------------------------------------------
# Fused forward on pre-padded inputs
# ----------------------------------------------------------------------------
def gcn_forward_padded(x_p, w1_p, b1_p, w2_p, b2_p, a_p, *,
                       n, n_classes, tm, a_resident=None):
    n_pad, f_pad = x_p.shape
    h_pad = w1_p.shape[1]
    c_pad = w2_p.shape[1]
    n_tiles = n_pad // tm
    last = n_tiles - 1

    a_bytes = n_pad * n_pad * 2
    if a_resident is None:
        # Keep A_hat VMEM-resident (read from HBM once) while it fits
        # comfortably even on v7x (64 MiB physical VMEM); otherwise stream it.
        a_resident = a_bytes <= 24 * 1024 * 1024

    # Explicit VMEM residency estimate (single-buffered A copy, double-buffered
    # streamed blocks) -> derive vmem_limit_bytes instead of a blind constant.
    vmem_est = (2 * tm * f_pad * 2          # X row tiles (double-buffered)
                + 2 * f_pad * h_pad * 2     # W1
                + 2 * h_pad * c_pad * 2     # W2
                + 2 * tm * c_pad * 4        # output tiles (double-buffered)
                + n_pad * h_pad * 2         # X@W1 scratch
                + n_pad * c_pad * 2)        # H@W2 scratch
    vmem_est += a_bytes if a_resident else 2 * tm * n_pad * 2
    vmem_limit = int(max(vmem_est + 8 * 1024 * 1024, 16 * 1024 * 1024))

    if a_resident:
        # Raw HBM ref; copied once into a single-buffered VMEM scratch by the
        # manual DMA inside the kernel (overlapped with phase 0).
        a_spec = pl.BlockSpec(memory_space=pl.ANY)
        a_scratch = [pltpu.VMEM((n_pad, n_pad), jnp.bfloat16),
                     pltpu.SemaphoreType.DMA((1,))]
    else:
        # Large-graph / small-VMEM fallback: auto-pipelined (tm, n_pad) row
        # tiles of A_hat in phases 1 and 2 (accepts a 2x HBM read of A).
        a_spec = pl.BlockSpec((tm, n_pad),
                              lambda p, i: (jnp.where(p == 0, 0, i), 0))
        a_scratch = []

    kernel = functools.partial(_gcn_fused_kernel, tm=tm, a_resident=a_resident)

    out_p = pl.pallas_call(
        kernel,
        out_shape=jax.ShapeDtypeStruct((n_pad, c_pad), jnp.float32),
        grid_spec=pltpu.PrefetchScalarGridSpec(
            num_scalar_prefetch=0,
            grid=(3, n_tiles),                                   # (phase, row tile)
            in_specs=[
                # X row tiles are only consumed in phase 0; afterwards the
                # block is parked on the last tile so no re-fetch happens.
                pl.BlockSpec((tm, f_pad),
                             lambda p, i: (jnp.where(p == 0, i, last), 0)),
                pl.BlockSpec((f_pad, h_pad), lambda p, i: (0, 0)),   # W1 (small)
                pl.BlockSpec((1, h_pad),     lambda p, i: (0, 0)),   # b1
                pl.BlockSpec((h_pad, c_pad), lambda p, i: (0, 0)),   # W2 (small)
                pl.BlockSpec((1, c_pad),     lambda p, i: (0, 0)),   # b2
                a_spec,                                              # A_hat
            ],
            # Only phase 2 writes real output rows.  The output block index is
            # parked at 0 during phases 0/1 and the buffer is never written
            # there; Pallas only copies an output block back to HBM when its
            # block index changes, and the grid order is strictly sequential
            # ("arbitrary" on both axes), so no garbage write-back is emitted.
            out_specs=pl.BlockSpec((tm, c_pad),
                                   lambda p, i: (jnp.where(p == 2, i, 0), 0)),
            scratch_shapes=[pltpu.VMEM((n_pad, h_pad), jnp.bfloat16),   # X @ W1
                            pltpu.VMEM((n_pad, c_pad), jnp.bfloat16)]   # H @ W2
                           + a_scratch,
        ),
        compiler_params=pltpu.CompilerParams(
            # Scratch carries state across row tiles and phases -> must stay
            # sequential; do NOT mark either axis "parallel" in this fused form.
            dimension_semantics=("arbitrary", "arbitrary"),
            vmem_limit_bytes=vmem_limit,
        ),
    )(x_p, w1_p, b1_p, w2_p, b2_p, a_p)

    return out_p[:n, :n_classes]


def gcn_forward(x, a_hat, params, *, tm=None, a_resident=None):
    """Convenience wrapper: pad/cast + run (prefer calling prepare once)."""
    padded, meta = prepare_gcn_inputs(x, a_hat, params, tm=tm)
    return gcn_forward_padded(*padded, **meta, a_resident=a_resident)


# ----------------------------------------------------------------------------
# Glue: build normalized adjacency A_hat from an edge_index (plain JAX)
# ----------------------------------------------------------------------------
def build_norm_adj(edge_index, num_nodes, dtype=jnp.float32):
    src, dst = edge_index[0], edge_index[1]
    a = jnp.zeros((num_nodes, num_nodes), dtype=dtype)
    a = a.at[src, dst].set(1.0)
    a = jnp.maximum(a, a.T)                         # undirected
    a = a + jnp.eye(num_nodes, dtype=dtype)         # self loops
    deg = a.sum(axis=1)
    d_inv_sqrt = 1.0 / jnp.sqrt(jnp.maximum(deg, 1e-12))
    return a * d_inv_sqrt[:, None] * d_inv_sqrt[None, :]


def glorot(key, shape, dtype=jnp.float32):
    fan_in, fan_out = shape
    limit = jnp.sqrt(6.0 / (fan_in + fan_out))
    return jax.random.uniform(key, shape, dtype, minval=-limit, maxval=limit)


if __name__ == "__main__":
    # Small synthetic shapes standing in for Cora (1433 feats / 7 classes).
    N_NODES = 256
    NUM_FEATURES = 64
    HIDDEN = 32
    NUM_CLASSES = 8
    NUM_EDGES = 512

    key = jax.random.PRNGKey(0)
    k_x, k_src, k_dst, k_w1, k_w2 = jax.random.split(key, 5)

    # Node features, row-normalized like torch_geometric's NormalizeFeatures.
    x = jax.random.uniform(k_x, (N_NODES, NUM_FEATURES), jnp.float32)
    x = x / jnp.maximum(x.sum(axis=-1, keepdims=True), 1e-12)

    # Deterministic synthetic edge_index [2, E].
    src = jax.random.randint(k_src, (NUM_EDGES,), 0, N_NODES)
    dst = jax.random.randint(k_dst, (NUM_EDGES,), 0, N_NODES)
    edge_index = jnp.stack([src, dst], axis=0)

    a_hat = build_norm_adj(edge_index, N_NODES)

    # Deterministic parameter init (GCNConv: glorot weight, zero bias).
    w1 = glorot(k_w1, (NUM_FEATURES, HIDDEN))
    b1 = jnp.zeros((1, HIDDEN), jnp.float32)
    w2 = glorot(k_w2, (HIDDEN, NUM_CLASSES))
    b2 = jnp.zeros((1, NUM_CLASSES), jnp.float32)
    params = (w1, b1, w2, b2)

    # Pad / cast once per graph (hoisted), then run the fused kernel.
    padded, meta = prepare_gcn_inputs(x, a_hat, params)
    padded = jax.block_until_ready(padded)

    out = gcn_forward_padded(*padded, **meta)            # resident-A path
    out = jax.block_until_ready(out)

    # Also exercise the streaming-A fallback (large-graph / tight-VMEM mode).
    out_stream = gcn_forward_padded(*padded, **meta, a_resident=False)
    out_stream = jax.block_until_ready(out_stream)

    # Reference in plain JAX, with the same bf16 rounding of the big operands
    # that the kernel uses (accumulation is f32 in both paths).
    rnd = lambda t: t.astype(jnp.bfloat16).astype(jnp.float32)
    a_r, x_r, w1_r, w2_r = rnd(a_hat), rnd(x), rnd(w1), rnd(w2)
    ref = jnp.maximum(a_r @ (x_r @ w1_r) + b1, 0.0)
    ref = a_r @ (ref @ w2_r) + b2

    assert out.shape == (N_NODES, NUM_CLASSES)
    assert jnp.allclose(out, ref, atol=5e-3, rtol=5e-2), (
        "max abs err = %g" % float(jnp.max(jnp.abs(out - ref))))
    assert jnp.allclose(out_stream, ref, atol=5e-3, rtol=5e-2), (
        "stream max abs err = %g" % float(jnp.max(jnp.abs(out_stream - ref))))

    print("KERNEL_OK")
</pallas_src>

<mosaic_0001>
module attributes {stable_mosaic.version = 11 : i64} {
  func.func @_gcn_fused_kernel(%arg0: i32, %arg1: i32, %arg2: memref<256x128xbf16, #tpu.memory_space<vmem>>, %arg3: memref<128x128xbf16, #tpu.memory_space<vmem>>, %arg4: memref<1x128xf32, #tpu.memory_space<vmem>>, %arg5: memref<128x128xbf16, #tpu.memory_space<vmem>>, %arg6: memref<1x128xf32, #tpu.memory_space<vmem>>, %arg7: memref<256x256xbf16, #tpu.memory_space<any>>, %arg8: memref<256x128xf32, #tpu.memory_space<vmem>>, %arg9: memref<256x128xbf16, #tpu.memory_space<vmem>>, %arg10: memref<256x128xbf16, #tpu.memory_space<vmem>>, %arg11: memref<256x256xbf16, #tpu.memory_space<vmem>>, %arg12: memref<1x!tpu.dma_semaphore, #tpu.memory_space<semaphore_mem>>) attributes {dimension_semantics = [#tpu.dimension_semantics<arbitrary>, #tpu.dimension_semantics<arbitrary>], iteration_bounds = array<i64: 3, 1>, scalar_prefetch = 0 : i64, scratch_operands = 4 : i64, tpu.core_type = #tpu.core_type<tc>, window_params = [{transform_indices = @transform_0, window_bounds = array<i64: 256, 128>}, {pipeline_mode = #tpu.pipeline_mode<synchronous>, transform_indices = @transform_1, window_bounds = array<i64: 128, 128>}, {pipeline_mode = #tpu.pipeline_mode<synchronous>, transform_indices = @transform_2, window_bounds = array<i64: 1, 128>}, {pipeline_mode = #tpu.pipeline_mode<synchronous>, transform_indices = @transform_3, window_bounds = array<i64: 128, 128>}, {pipeline_mode = #tpu.pipeline_mode<synchronous>, transform_indices = @transform_4, window_bounds = array<i64: 1, 128>}, {}, {transform_indices = @transform_6, window_bounds = array<i64: 256, 128>}]} {
    %c256_i32 = arith.constant 256 : i32
    %0 = arith.muli %arg1, %c256_i32 : i32
    %1 = tpu.assume_multiple %0, 256 : i32
    %c0_i32 = arith.constant 0 : i32
    %2 = arith.cmpi eq, %arg0, %c0_i32 : i32
    %c0_i32_0 = arith.constant 0 : i32
    %3 = arith.cmpi eq, %arg1, %c0_i32_0 : i32
    %4 = arith.andi %2, %3 : i1
    %5 = arith.extui %4 : i1 to i32
    %c0_i32_1 = arith.constant 0 : i32
    %6 = arith.cmpi ne, %5, %c0_i32_1 : i32
    scf.if %6 {
      %c0_i32_9 = arith.constant 0 : i32
      %21 = tpu.memref_slice %arg12[%c0_i32_9] : memref<1x!tpu.dma_semaphore, #tpu.memory_space<semaphore_mem>> -> memref<1x!tpu.dma_semaphore, #tpu.memory_space<semaphore_mem>>
      %22 = tpu.memref_squeeze %21 : memref<1x!tpu.dma_semaphore, #tpu.memory_space<semaphore_mem>> -> memref<!tpu.dma_semaphore, #tpu.memory_space<semaphore_mem>>
      tpu.enqueue_dma source(%arg7 : memref<256x256xbf16, #tpu.memory_space<any>>) target(%arg11 : memref<256x256xbf16, #tpu.memory_space<vmem>>) target_semaphore(%22 : memref<!tpu.dma_semaphore, #tpu.memory_space<semaphore_mem>>)
    } else {
    }
    %c1_i32 = arith.constant 1 : i32
    %7 = arith.cmpi eq, %arg0, %c1_i32 : i32
    %c0_i32_2 = arith.constant 0 : i32
    %8 = arith.cmpi eq, %arg1, %c0_i32_2 : i32
    %9 = arith.andi %7, %8 : i1
    %10 = arith.extui %9 : i1 to i32
    %c0_i32_3 = arith.constant 0 : i32
    %11 = arith.cmpi ne, %10, %c0_i32_3 : i32
    scf.if %11 {
      %c0_i32_9 = arith.constant 0 : i32
      %21 = tpu.memref_slice %arg12[%c0_i32_9] : memref<1x!tpu.dma_semaphore, #tpu.memory_space<semaphore_mem>> -> memref<1x!tpu.dma_semaphore, #tpu.memory_space<semaphore_mem>>
      %22 = tpu.memref_squeeze %21 : memref<1x!tpu.dma_semaphore, #tpu.memory_space<semaphore_mem>> -> memref<!tpu.dma_semaphore, #tpu.memory_space<semaphore_mem>>
      tpu.wait_dma2 semaphore(%22 : memref<!tpu.dma_semaphore, #tpu.memory_space<semaphore_mem>>) src(%arg7 : memref<256x256xbf16, #tpu.memory_space<any>>) dst(%arg11 : memref<256x256xbf16, #tpu.memory_space<vmem>>)
    } else {
    }
    %c0_i32_4 = arith.constant 0 : i32
    %12 = arith.cmpi eq, %arg0, %c0_i32_4 : i32
    %13 = arith.extui %12 : i1 to i32
    %c0_i32_5 = arith.constant 0 : i32
    %14 = arith.cmpi ne, %13, %c0_i32_5 : i32
    scf.if %14 {
      %c0 = arith.constant 0 : index
      %c0_9 = arith.constant 0 : index
      %21 = vector.load %arg2[%c0, %c0_9] : memref<256x128xbf16, #tpu.memory_space<vmem>>, vector<256x128xbf16>
      %c0_10 = arith.constant 0 : index
      %c0_11 = arith.constant 0 : index
      %22 = vector.load %arg3[%c0_10, %c0_11] : memref<128x128xbf16, #tpu.memory_space<vmem>>, vector<128x128xbf16>
      %cst = arith.constant dense<0.000000e+00> : vector<256x128xf32>
      %23 = tpu.matmul %21, %22, %cst {dimension_numbers = #tpu.dot_dimension_numbers<[1], [0], [0], [1], [0, 0, 1, 1], [], []>} : vector<256x128xbf16>, vector<128x128xbf16>, vector<256x128xf32> -> vector<256x128xf32>
      %24 = arith.truncf %23 : vector<256x128xf32> to vector<256x128xbf16>
      %25 = arith.index_cast %1 : i32 to index
      %c0_12 = arith.constant 0 : index
      %26 = vector.load %arg9[%25, %c0_12] : memref<256x128xbf16, #tpu.memory_space<vmem>>, vector<256x128xbf16>
      tpu.vector_store %arg9[%25, %c0_12], %24 {strides = array<i32>} : memref<256x128xbf16, #tpu.memory_space<vmem>>, vector<256x128xbf16>,
    } else {
    }
    %c1_i32_6 = arith.constant 1 : i32
    %15 = arith.cmpi eq, %arg0, %c1_i32_6 : i32
    %16 = arith.extui %15 : i1 to i32
    %c0_i32_7 = arith.constant 0 : i32
    %17 = arith.cmpi ne, %16, %c0_i32_7 : i32
    scf.if %17 {
      %21 = arith.index_cast %1 : i32 to index
      %c0 = arith.constant 0 : index
      %22 = vector.load %arg11[%21, %c0] : memref<256x256xbf16, #tpu.memory_space<vmem>>, vector<256x256xbf16>
      %c0_9 = arith.constant 0 : index
      %c0_10 = arith.constant 0 : index
      %23 = vector.load %arg9[%c0_9, %c0_10] : memref<256x128xbf16, #tpu.memory_space<vmem>>, vector<256x128xbf16>
      %cst = arith.constant dense<0.000000e+00> : vector<256x128xf32>
      %24 = tpu.matmul %22, %23, %cst {dimension_numbers = #tpu.dot_dimension_numbers<[1], [0], [0], [1], [0, 0, 1, 1], [], []>} : vector<256x256xbf16>, vector<256x128xbf16>, vector<256x128xf32> -> vector<256x128xf32>
      %c0_11 = arith.constant 0 : index
      %c0_12 = arith.constant 0 : index
      %25 = vector.load %arg4[%c0_11, %c0_12] : memref<1x128xf32, #tpu.memory_space<vmem>>, vector<1x128xf32>
      %26 = vector.broadcast %25 : vector<1x128xf32> to vector<256x128xf32>
      %27 = arith.addf %24, %26 : vector<256x128xf32>
      %cst_13 = arith.constant 0.000000e+00 : f32
      %28 = vector.broadcast %cst_13 : f32 to vector<256x128xf32>
      %29 = arith.maximumf %27, %28 : vector<256x128xf32>
      %30 = arith.truncf %29 : vector<256x128xf32> to vector<256x128xbf16>
      %c0_14 = arith.constant 0 : index
      %c0_15 = arith.constant 0 : index
      %31 = vector.load %arg5[%c0_14, %c0_15] : memref<128x128xbf16, #tpu.memory_space<vmem>>, vector<128x128xbf16>
      %cst_16 = arith.constant dense<0.000000e+00> : vector<256x128xf32>
      %32 = tpu.matmul %30, %31, %cst_16 {dimension_numbers = #tpu.dot_dimension_numbers<[1], [0], [0], [1], [0, 0, 1, 1], [], []>} : vector<256x128xbf16>, vector<128x128xbf16>, vector<256x128xf32> -> vector<256x128xf32>
      %33 = arith.truncf %32 : vector<256x128xf32> to vector<256x128xbf16>
      %34 = arith.index_cast %1 : i32 to index
      %c0_17 = arith.constant 0 : index
      %35 = vector.load %arg10[%34, %c0_17] : memref<256x128xbf16, #tpu.memory_space<vmem>>, vector<256x128xbf16>
      tpu.vector_store %arg10[%34, %c0_17], %33 {strides = array<i32>} : memref<256x128xbf16, #tpu.memory_space<vmem>>, vector<256x128xbf16>,
    } else {
    }
    %c2_i32 = arith.constant 2 : i32
    %18 = arith.cmpi eq, %arg0, %c2_i32 : i32
    %19 = arith.extui %18 : i1 to i32
    %c0_i32_8 = arith.constant 0 : i32
    %20 = arith.cmpi ne, %19, %c0_i32_8 : i32
    scf.if %20 {
      %21 = arith.index_cast %1 : i32 to index
      %c0 = arith.constant 0 : index
      %22 = vector.load %arg11[%21, %c0] : memref<256x256xbf16, #tpu.memory_space<vmem>>, vector<256x256xbf16>
      %c0_9 = arith.constant 0 : index
      %c0_10 = arith.constant 0 : index
      %23 = vector.load %arg10[%c0_9, %c0_10] : memref<256x128xbf16, #tpu.memory_space<vmem>>, vector<256x128xbf16>
      %cst = arith.constant dense<0.000000e+00> : vector<256x128xf32>
      %24 = tpu.matmul %22, %23, %cst {dimension_numbers = #tpu.dot_dimension_numbers<[1], [0], [0], [1], [0, 0, 1, 1], [], []>} : vector<256x256xbf16>, vector<256x128xbf16>, vector<256x128xf32> -> vector<256x128xf32>
      %c0_11 = arith.constant 0 : index
      %c0_12 = arith.constant 0 : index
      %25 = vector.load %arg6[%c0_11, %c0_12] : memref<1x128xf32, #tpu.memory_space<vmem>>, vector<1x128xf32>
      %26 = vector.broadcast %25 : vector<1x128xf32> to vector<256x128xf32>
      %27 = arith.addf %24, %26 : vector<256x128xf32>
      %c0_13 = arith.constant 0 : index
      %c0_14 = arith.constant 0 : index
      %28 = vector.load %arg8[%c0_13, %c0_14] : memref<256x128xf32, #tpu.memory_space<vmem>>, vector<256x128xf32>
      tpu.vector_store %arg8[%c0_13, %c0_14], %27 {strides = array<i32>} : memref<256x128xf32, #tpu.memory_space<vmem>>, vector<256x128xf32>,
    } else {
    }
    return
  }
  func.func @transform_0(%arg0: i32, %arg1: i32) -> (i32, i32) {
    %c0_i32 = arith.constant 0 : i32
    %0 = arith.cmpi eq, %arg0, %c0_i32 : i32
    %c0_i32_0 = arith.constant 0 : i32
    %1 = arith.select %0, %arg1, %c0_i32_0 : i32
    %c0_i32_1 = arith.constant 0 : i32
    %c0_i32_2 = arith.constant 0 : i32
    return %1, %c0_i32_1 : i32, i32
  }
  func.func @transform_1(%arg0: i32, %arg1: i32) -> (i32, i32) {
    %c0_i32 = arith.constant 0 : i32
    %c0_i32_0 = arith.constant 0 : i32
    %c0_i32_1 = arith.constant 0 : i32
    return %c0_i32, %c0_i32_0 : i32, i32
  }
  func.func @transform_2(%arg0: i32, %arg1: i32) -> (i32, i32) {
    %c0_i32 = arith.constant 0 : i32
    %c0_i32_0 = arith.constant 0 : i32
    %c0_i32_1 = arith.constant 0 : i32
    return %c0_i32, %c0_i32_0 : i32, i32
  }
  func.func @transform_3(%arg0: i32, %arg1: i32) -> (i32, i32) {
    %c0_i32 = arith.constant 0 : i32
    %c0_i32_0 = arith.constant 0 : i32
    %c0_i32_1 = arith.constant 0 : i32
    return %c0_i32, %c0_i32_0 : i32, i32
  }
  func.func @transform_4(%arg0: i32, %arg1: i32) -> (i32, i32) {
    %c0_i32 = arith.constant 0 : i32
    %c0_i32_0 = arith.constant 0 : i32
    %c0_i32_1 = arith.constant 0 : i32
    return %c0_i32, %c0_i32_0 : i32, i32
  }
  func.func @transform_6(%arg0: i32, %arg1: i32) -> (i32, i32) {
    %c2_i32 = arith.constant 2 : i32
    %0 = arith.cmpi eq, %arg0, %c2_i32 : i32
    %c0_i32 = arith.constant 0 : i32
    %1 = arith.select %0, %arg1, %c0_i32 : i32
    %c0_i32_0 = arith.constant 0 : i32
    %c0_i32_1 = arith.constant 0 : i32
    return %1, %c0_i32_0 : i32, i32
  }
}

</mosaic_0001>

<bundles_post_ra>
// kernel: tpu_custom_call.1
= control target key start
LH: loop header
LB: loop body
LE: loop exit
PB: predicated region body
PF: predicated region fallthrough
CT: control target
= control target key end

     0   :  { %11 = vsyncpa [#allocation7], 0  ;;  %s2743_s0 = inlined_call_operand.hbm [shape: bf16[256,128], index: 0, kind: input, shape index: {}]   ;;  %s2744_s1 = inlined_call_operand.hbm [shape: bf16[128,128], index: 1, kind: input, shape index: {}]   ;;  %s2745_s2 = inlined_call_operand.vmem [shape: f32[1,128], index: 2, kind: input, shape index: {}]   ;;  %s2746_s3 = inlined_call_operand.hbm [shape: bf16[128,128], index: 3, kind: input, shape index: {}]   ;;  %s2747_s4 = inlined_call_operand.vmem [shape: f32[1,128], index: 4, kind: input, shape index: {}]   ;;  %s2748_s5 = inlined_call_operand.hbm [shape: bf16[256,256], index: 5, kind: input, shape index: {}]   ;;  %s2749_s6 = inlined_call_operand.hbm [shape: f32[256,128], index: 6, kind: output, shape index: {}]  }
   0x1   :  { %13 = vsyncpa [#allocation7 + $0x1], 0 }
   0x2   :  { %14 = vsyncpa [#allocation10], 0 }
   0x3   :  { %15 = vsyncpa [#allocation8], 0 }
   0x4   :  { %17 = vsyncpa [#allocation8 + $0x1], 0  ;;  %s2464_s21 = smov 0   ;;  %s2466_s22 = smov 0  }
   0x5   :  { %s2468_s23 = smov 0  }
   0x6 LB: > { %s1663_s24 = sadd.s32 4294967295, %s2411_s23   ;;  %s1664_s25 = sadd.s32 4294967294, %s2411_s23   ;;  %s2411_s23 = sphi %s2468_s23, %s23_s23   ;;  %s2407_s22 = sphi %s2466_s22, %s2763_s22   ;;  %s2403_s21 = sphi %s2464_s21, %s2762_s21  }
   0x7   : > { %s35_s26 = sadd.s32 1, %s2407_s22  ;;  %p1665_p0 = scmp.ge.s32.totalorder %s2411_s23, 1 }
   0x8   : > { %p37_p1 = scmp.ge.s32.totalorder %s35_s26, 3  ;;  %p184_p2 = scmp.lt.s32.totalorder %s2411_s23, 4 }
   0x9   : > { %p2486_p3 = scmp.eq.s32.totalorder %s1663_s24, 0  ;;  %s2413_s29 = smov [#allocation9]  }
   0xa   : > { %s2765_s26 = smov (%p37_p1, %s35_s26), 0  ;;  %p2492_p4 = pnand %p1665_p0, %p184_p2 }
   0xb   : > { %s2753_s27 = scalar_select %p2486_p3, 1, 0 }
   0xc   : > { %s2754_s28 = scalar_select %p2492_p4, 1, 0 }
   0xd   : > { %s196_s30 = sshll.u32 %s2413_s29, 4  ;;  %p2166_p5 = pneg %p2492_p4  ;;  %s197_s30 = int_to_ptr.vmem [resolvable:$true] %s196_s30 }
   0xe   : > { %s2414_s8 = smov [#allocation11]   ;;  %s2263_s12 = scalar_lea.hbm %s2744_s1, 1024 }
   0xf   : > { %p2500_p6 = pnand %p2486_p3, %p2166_p5  ;;  %s212_s9 = sshll.u32 %s2414_s8, 4  ;;  %s213_s9 = int_to_ptr.vmem [resolvable:$true] %s212_s9 }
  0x10   : > { %p2264_p8 = scmp.ne.s32.totalorder %s2744_s1, %s2263_s12  ;;  %p2270_p12 = scmp.lt.u32.totalorder %s2263_s12, %s2744_s1 }
  0x11   : > { %p2265_p9 = pneg %p2500_p6 }
  0x13   : > { %p2266_p10 = pnand %p2265_p9, %p2264_p8 }
  0x15   : > { %p2267_p11 = pneg %p2266_p10 }
  0x17   : > { %p2272_p13 = pnand %p2270_p12, %p2267_p11 }
  0x19   : > { %2275 = shalt.err (!%p2272_p13)
}
  0x1a   : > { %s2276_s17 = scalar_lea.vmem %s197_s30, 1024  ;;  %p2284_p5 = scmp.lt.s32.totalorder %s197_s30, %s197_s30 }
  0x1b   : > { %p2277_p0 = scmp.ne.s32.totalorder %s197_s30, %s2276_s17  ;;  %p2285_p7 = scmp.lt.s32.totalorder %s2276_s17, %s2276_s17 }
  0x1d   : > { %p2279_p1 = pnand %p2277_p0, %p2265_p9  ;;  %p2286_p3 = por %p2285_p7, %p2284_p5 }
  0x1f   : > { %p2280_p2 = pneg %p2279_p1 }
  0x21   : > { %p2287_p4 = pnand %p2286_p3, %p2280_p2 }
  0x23   : > { %2290 = shalt.err (!%p2287_p4)
}
  0x24   : > { %s2415_s18 = smov 64   ;;  %s2416_s19 = smov 4  }
  0x25   : > { %2169 = dma.hbm_to_vmem [thread:$0]  (!%p2500_p6), %s2744_s1, 1024, %s197_s30, [#allocation10], %s2415_s18, %s2415_s18, %s2416_s19  }
  0x26   : > { %s2291_s11 = scalar_lea.hbm %s2746_s3, 1024 }
  0x27   : > { %p2292_p3 = scmp.ne.s32.totalorder %s2746_s3, %s2291_s11  ;;  %p2298_p10 = scmp.lt.u32.totalorder %s2291_s11, %s2746_s3 }
  0x29   : > { %p2294_p4 = pnand %p2292_p3, %p2265_p9 }
  0x2b   : > { %p2295_p7 = pneg %p2294_p4 }
  0x2d   : > { %p2300_p11 = pnand %p2298_p10, %p2295_p7 }
  0x2f   : > { %2303 = shalt.err (!%p2300_p11)
}
  0x30   : > { %s2304_s30 = scalar_lea.vmem %s213_s9, 1024  ;;  %p2312_p1 = scmp.lt.s32.totalorder %s213_s9, %s213_s9 }
  0x31   : > { %p2305_p12 = scmp.ne.s32.totalorder %s213_s9, %s2304_s30  ;;  %p2313_p2 = scmp.lt.s32.totalorder %s2304_s30, %s2304_s30 }
  0x33   : > { %p2307_p13 = pnand %p2305_p12, %p2265_p9  ;;  %p2314_p5 = por %p2313_p2, %p2312_p1 }
  0x35   : > { %p2308_p0 = pneg %p2307_p13 }
  0x37   : > { %p2315_p8 = pnand %p2314_p5, %p2308_p0 }
  0x39   : > { %2318 = shalt.err (!%p2315_p8)
}
  0x3a   : > { %2172 = dma.hbm_to_vmem [thread:$0]  (!%p2500_p6), %s2746_s3, 1024, %s213_s9, [#allocation10], %s2415_s18, %s2415_s18, %s2416_s19  }
  0x3b   : > { %p2756_p3 = scmp.lt.s32.totalorder %s2411_s23, 3  ;;  %p2757_p4 = scmp.eq.s32.totalorder %s2411_s23, 0 }
  0x3c   : > { %s2417_s29 = smov [#allocation6]   ;;  %s2319_s11 = scalar_lea.hbm %s2743_s0, 2048 }
  0x3d   : > { %p2558_p9 = pnand %p2757_p4, %p2756_p3  ;;  %s242_s8 = sshll.u32 %s2417_s29, 4  ;;  %s243_s8 = int_to_ptr.vmem [resolvable:$true] %s242_s8 }
  0x3e   : > { %p2320_p8 = scmp.ne.s32.totalorder %s2743_s0, %s2319_s11  ;;  %p2326_p11 = scmp.lt.u32.totalorder %s2319_s11, %s2743_s0 }
  0x3f   : > { %p2321_p6 = pneg %p2558_p9 }
  0x41   : > { %p2322_p7 = pnand %p2321_p6, %p2320_p8 }
  0x43   : > { %p2323_p10 = pneg %p2322_p7 }
  0x45   : > { %p2328_p12 = pnand %p2326_p11, %p2323_p10 }
  0x47   : > { %2331 = shalt.err (!%p2328_p12)
}
  0x48   : > { %s2332_s15 = scalar_lea.vmem %s243_s8, 2048  ;;  %s2339_s30 = scalar_lea.vmem %s243_s8, 4096 }
  0x49   : > { %p2333_p13 = scmp.ne.s32.totalorder %s243_s8, %s2332_s15  ;;  %p2340_p2 = scmp.lt.s32.totalorder %s243_s8, %s243_s8 }
  0x4a   : > { %p2341_p5 = scmp.lt.s32.totalorder %s2339_s30, %s2332_s15 }
  0x4b   : > { %p2335_p0 = pnand %p2333_p13, %p2321_p6 }
  0x4c   : > { %p2342_p3 = por %p2341_p5, %p2340_p2 }
  0x4d   : > { %p2336_p1 = pneg %p2335_p0 }
  0x4f   : > { %p2343_p4 = pnand %p2342_p3, %p2336_p1 }
  0x51   : > { %2346 = shalt.err (!%p2343_p4)
}
  0x52   : > { %2176 = dma.hbm_to_vmem [thread:$0]  (!%p2558_p9), %s2743_s0, 2048, %s243_s8, [#allocation7], %s2415_s18, %s2415_s18, %s2416_s19  }
  0x53   : > { %p2759_p8 = scmp.ne.s32.totalorder %s2754_s28, 0 }
  0x54   : > { %p2760_p6 = scmp.ne.s32.totalorder (!%p2759_p8), %s2753_s27, 0 }
  0x55   : > { %254 = sbr.rel (%p2759_p8) target bundleno = 1299 (0x513), region = 40 }
  0x5c   : > { %2386 = dma.done.wait (%p2760_p6), [#allocation7], 2048  }
  0x5d   : > { %2388 = vsyncadd (%p2760_p6), [#allocation7], 4294965248 }
  0x5e   : > { %2390 = dma.done.wait (%p2760_p6), [#allocation10], 2048  }
  0x5f   : > { %2392 = vsyncadd (%p2760_p6), [#allocation10], 4294965248  ;;  %p303_p7 = scmp.eq.s32.totalorder %s2403_s21, 0 }
  0x60   : > { %s2418_s19 = smov [#allocation4]   ;;  %s2419_s27 = smov 256  }
  0x61   : > { %s2150_s28 = scalar_select %p303_p7, [#allocation0], [#allocation15] }
  0x62   : > { %s321_s20 = sshll.u32 %s2418_s19, 4  ;;  %2151 = sst [smem:[#allocation14]] (%p303_p7), %s2419_s27  ;;  %s322_s20 = int_to_ptr.vmem [resolvable:$true] %s321_s20 }
  0x63   : > { %s313_s18 = sld [smem:[%s2150_s28]]   ;;  %s2420_s29 = smov 2  }
  0x64   : > { %2152 = sst [smem:[#allocation14 + $0x1]] (%p303_p7), %s2419_s27  ;;  %s2421_s8 = smov 64  }
  0x65   : > { %2153 = sst [smem:[#allocation14 + $0x2]] (%p303_p7), %s2420_s29  ;;  %s2422_s7 = smov 128  }
  0x66   : > { %2154 = sst [smem:[#allocation14 + $0x3]] (%p303_p7), %s2421_s8  ;;  %s2423_s12 = smov 4  }
  0x67   : > { %2155 = sst [smem:[#allocation14 + $0x4]] (%p303_p7), %s2422_s7  ;;  %s2424_s13 = smov [#allocation5]  }
  0x68   : > { %2156 = sst [smem:[#allocation14 + $0x5]] (%p303_p7), %s2420_s29  ;;  %s2425_s9 = smov [#allocation13]  }
  0x69   : > { %s1675_s10 = sshll.u32 %s313_s18, 26  ;;  %2157 = sst [smem:[#allocation14 + $0x6]] (%p303_p7), %s2422_s7 }
  0x6a   : > { %s1676_s11 = sadd.s32 134217728, %s1675_s10  ;;  %2158 = sst [smem:[#allocation14 + $0x7]] (%p303_p7), %s2421_s8 }
  0x6b   : > { %2159 = sst [smem:[#allocation14 + $0x8]] (%p303_p7), %s2423_s12  ;;  %p344_p9 = scmp.eq.s32.totalorder %s2403_s21, 1 }
  0x6c   : > { %2160 = dma.general (%p303_p7), %s2748_s5, 4096, %s322_s20, %s2424_s13, %s2425_s9, [#allocation14], %s1676_s11, 0  }
  0x6d   : > { %2394 = dma.done.wait (%p344_p9), [#allocation5], 4096 }
  0x6e   : > { %2396 = vsyncadd (%p344_p9), [#allocation5], 4294963200  ;;  %p1678_p10 = scmp.ne.s32.totalorder %s2403_s21, 0 }
  0x6f   : > { %v2231_v0 = vld [vmem:[#allocation9] sm:$0xff] (!%p1678_p10)   ;;  %v2232_v1 = vld [vmem:[#allocation9 + $0x8] sm:$0xff] (!%p1678_p10)   ;;  %v2233_v2 = vld [vmem:[#allocation9 + $0x10] sm:$0xff] (!%p1678_p10)  }
  0x70   : > { %355 = sbr.rel (%p1678_p10) target bundleno = 386 (0x182), region = 64  ;;  %1994 = vmatprep.subr.bf16.mxu0 (!%p1678_p10), %v2231_v0  ;;  %2090 = vmatprep.subr.bf16.mxu1 (!%p1678_p10), %v2231_v0  ;;  %v2234_v3 = vld [vmem:[#allocation9 + $0x18] sm:$0xff] (!%p1678_p10)   ;;  %v2239_v4 = vld [vmem:[#allocation6] sm:$0xff] (!%p1678_p10)   ;;  %v2236_v7 = vld [vmem:[#allocation9 + $0x28] sm:$0xff] (!%p1678_p10)  }
  0x71   : > { %1995 = vmatpush3.bf16.msra.mxu0 (!%p1678_p10), %v2231_v0  ;;  %2098 = vmatpush3.bf16.msra.mxu1 (!%p1678_p10), %v2231_v0  ;;  %v2240_v5 = vld [vmem:[#allocation6 + $0x40] sm:$0xff] (!%p1678_p10)   ;;  %v2237_v8 = vld [vmem:[#allocation9 + $0x30] sm:$0xff] (!%p1678_p10)   ;;  %v2238_v9 = vld [vmem:[#allocation9 + $0x38] sm:$0xff] (!%p1678_p10)  }
  0x72   : > { %1996 = vmatprep.subr.bf16.mxu0 (!%p1678_p10), %v2232_v1  ;;  %2091 = vmatprep.subr.bf16.mxu1 (!%p1678_p10), %v2232_v1  ;;  %v2235_v6 = vld [vmem:[#allocation9 + $0x20] sm:$0xff] (!%p1678_p10)   ;;  %v2241_v10 = vld [vmem:[#allocation6 + $0x8] sm:$0xff] (!%p1678_p10)   ;;  %v2243_v12 = vld [vmem:[#allocation6 + $0x10] sm:$0xff] (!%p1678_p10)  }
  0x73   : > { %2010 = vmatprep.mubr.bf16.mxu0 (!%p1678_p10), %v2239_v4  ;;  %2026 = vmatprep.mubr.bf16.mxu1 (!%p1678_p10), %v2240_v5  ;;  %v2242_v11 = vld [vmem:[#allocation6 + $0x48] sm:$0xff] (!%p1678_p10)   ;;  %v2244_v13 = vld [vmem:[#allocation6 + $0x50] sm:$0xff] (!%p1678_p10)   ;;  %v2245_v14 = vld [vmem:[#allocation6 + $0x18] sm:$0xff] (!%p1678_p10)  }
  0x74   : > { %v2246_v15 = vld [vmem:[#allocation6 + $0x58] sm:$0xff] (!%p1678_p10)   ;;  %v2247_v16 = vld [vmem:[#allocation6 + $0x20] sm:$0xff] (!%p1678_p10)   ;;  %v2249_v18 = vld [vmem:[#allocation6 + $0x28] sm:$0xff] (!%p1678_p10)  }
  0x75   : > { %1997 = vmatpush3.bf16.msra.mxu0 (!%p1678_p10), %v2232_v1  ;;  %2099 = vmatpush3.bf16.msra.mxu1 (!%p1678_p10), %v2232_v1  ;;  %v2248_v17 = vld [vmem:[#allocation6 + $0x60] sm:$0xff] (!%p1678_p10)   ;;  %v2250_v19 = vld [vmem:[#allocation6 + $0x68] sm:$0xff] (!%p1678_p10)   ;;  %v2251_v20 = vld [vmem:[#allocation6 + $0x30] sm:$0xff] (!%p1678_p10)  }
  0x76   : > { %1998 = vmatprep.subr.bf16.mxu0 (!%p1678_p10), %v2233_v2  ;;  %2092 = vmatprep.subr.bf16.mxu1 (!%p1678_p10), %v2233_v2  ;;  %v2252_v21 = vld [vmem:[#allocation6 + $0x70] sm:$0xff] (!%p1678_p10)   ;;  %v2253_v22 = vld [vmem:[#allocation6 + $0x38] sm:$0xff] (!%p1678_p10)  }
  0x77   : > { %v2254_v23 = vld [vmem:[#allocation6 + $0x78] sm:$0xff]  }
  0x79   : > { %1999 = vmatpush3.bf16.msra.mxu0 %v2233_v2  ;;  %2100 = vmatpush3.bf16.msra.mxu1 %v2233_v2 }
  0x7a   : > { %2000 = vmatprep.subr.bf16.mxu0 %v2234_v3  ;;  %2093 = vmatprep.subr.bf16.mxu1 %v2234_v3 }
  0x7d   : > { %2001 = vmatpush3.bf16.msra.mxu0 %v2234_v3  ;;  %2101 = vmatpush3.bf16.msra.mxu1 %v2234_v3 }
  0x7e   : > { %2002 = vmatprep.subr.bf16.mxu0 %v2235_v6  ;;  %2094 = vmatprep.subr.bf16.mxu1 %v2235_v6 }
  0x81   : > { %2003 = vmatpush3.bf16.msra.mxu0 %v2235_v6  ;;  %2102 = vmatpush3.bf16.msra.mxu1 %v2235_v6 }
  0x82   : > { %2004 = vmatprep.subr.bf16.mxu0 %v2236_v7  ;;  %2095 = vmatprep.subr.bf16.mxu1 %v2236_v7 }
  0x85   : > { %2005 = vmatpush3.bf16.msra.mxu0 %v2236_v7  ;;  %2103 = vmatpush3.bf16.msra.mxu1 %v2236_v7 }
  0x86   : > { %2006 = vmatprep.subr.bf16.mxu0 %v2237_v8  ;;  %2096 = vmatprep.subr.bf16.mxu1 %v2237_v8 }
  0x89   : > { %2007 = vmatpush3.bf16.msra.mxu0 %v2237_v8  ;;  %2104 = vmatpush3.bf16.msra.mxu1 %v2237_v8 }
  0x8a   : > { %2008 = vmatprep.subr.bf16.mxu0 %v2238_v9  ;;  %2097 = vmatprep.subr.bf16.mxu1 %v2238_v9 }
  0x8d   : > { %2009 = vmatpush3.bf16.msra.mxu0 %v2238_v9  ;;  %2105 = vmatpush3.bf16.msra.mxu1 %v2238_v9 }
  0x90   : > { %2011 = vmatmul.mubr.bf16.vlgmr.msra.gmra.mrb[0].mxu0 %v2241_v10  ;;  %2027 = vmatmul.mubr.bf16.vlgmr.msra.gmra.mrb[0].mxu1 %v2242_v11 }
  0x91   : > { %2014 = vmatprep.mubr.bf16.mxu0 %v2243_v12  ;;  %2030 = vmatprep.mubr.bf16.mxu1 %v2244_v13 }
  0x98   : > { %2015 = vmatmul.mubr.bf16.gmra.mrb[4].mxu0 %v2245_v14  ;;  %2031 = vmatmul.mubr.bf16.gmra.mrb[4].mxu1 %v2246_v15 }
  0x99   : > { %2018 = vmatprep.mubr.bf16.mxu0 %v2247_v16  ;;  %2034 = vmatprep.mubr.bf16.mxu1 %v2248_v17 }
  0xa0   : > { %2019 = vmatmul.mubr.bf16.gmra.mrb[8].mxu0 %v2249_v18  ;;  %2035 = vmatmul.mubr.bf16.gmra.mrb[8].mxu1 %v2250_v19 }
  0xa1   : > { %2022 = vmatprep.mubr.bf16.mxu0 %v2251_v20  ;;  %2038 = vmatprep.mubr.bf16.mxu1 %v2252_v21 }
  0xa8   : > { %2023 = vmatmul.mubr.bf16.gmra.mrb[12].mxu0 %v2253_v22  ;;  %2039 = vmatmul.mubr.bf16.gmra.mrb[12].mxu1 %v2254_v23 }
 0x163   : > { %v2012_v24 = vpop.f32.mrb[0].mxu0  ;;  %v2028_v25 = vpop.f32.mrb[0].mxu1 }
 0x164   : > { %v582_v26 = vpop.f32.mrb[1].mxu0  ;;  %v646_v27 = vpop.f32.mrb[1].mxu1 }
 0x165   : > { %v2013_v28 = vpop.f32.mrb[2].mxu0  ;;  %v2029_v29 = vpop.f32.mrb[2].mxu1 }
 0x166   : > { %v710_v30 = vpack.c.bf16 %v2013_v28, %v2012_v24  ;;  %v718_v31 = vpack.c.bf16 %v2029_v29, %v2028_v25  ;;  %v585_v32 = vpop.f32.mrb[3].mxu0  ;;  %v649_v33 = vpop.f32.mrb[3].mxu1 }
 0x167   : > { %v709_v34 = vpack.c.bf16 %v585_v32, %v582_v26  ;;  %v717_v35 = vpack.c.bf16 %v649_v33, %v646_v27 }
 0x168   : > { %730 = vst [vmem:[#allocation2 + $0x8] sm:$0xff] %v710_v30  ;;  %738 = vst [vmem:[#allocation2 + $0x48] sm:$0xff] %v718_v31 }
 0x169   : > { %729 = vst [vmem:[#allocation2] sm:$0xff] %v709_v34  ;;  %737 = vst [vmem:[#allocation2 + $0x40] sm:$0xff] %v717_v35 }
 0x16b   : > { %v2016_v36 = vpop.f32.mrb[4].mxu0  ;;  %v2032_v37 = vpop.f32.mrb[4].mxu1 }
 0x16c   : > { %v598_v38 = vpop.f32.mrb[5].mxu0  ;;  %v662_v39 = vpop.f32.mrb[5].mxu1 }
 0x16d   : > { %v2017_v40 = vpop.f32.mrb[6].mxu0  ;;  %v2033_v41 = vpop.f32.mrb[6].mxu1 }
 0x16e   : > { %v712_v42 = vpack.c.bf16 %v2017_v40, %v2016_v36  ;;  %v720_v43 = vpack.c.bf16 %v2033_v41, %v2032_v37  ;;  %v601_v44 = vpop.f32.mrb[7].mxu0  ;;  %v665_v45 = vpop.f32.mrb[7].mxu1 }
 0x16f   : > { %v711_v46 = vpack.c.bf16 %v601_v44, %v598_v38  ;;  %v719_v47 = vpack.c.bf16 %v665_v45, %v662_v39 }
 0x170   : > { %732 = vst [vmem:[#allocation2 + $0x18] sm:$0xff] %v712_v42  ;;  %740 = vst [vmem:[#allocation2 + $0x58] sm:$0xff] %v720_v43 }
 0x171   : > { %731 = vst [vmem:[#allocation2 + $0x10] sm:$0xff] %v711_v46  ;;  %739 = vst [vmem:[#allocation2 + $0x50] sm:$0xff] %v719_v47 }
 0x173   : > { %v2020_v48 = vpop.f32.mrb[8].mxu0  ;;  %v2036_v49 = vpop.f32.mrb[8].mxu1 }
 0x174   : > { %v614_v50 = vpop.f32.mrb[9].mxu0  ;;  %v678_v51 = vpop.f32.mrb[9].mxu1 }
 0x175   : > { %v2021_v52 = vpop.f32.mrb[10].mxu0  ;;  %v2037_v53 = vpop.f32.mrb[10].mxu1 }
 0x176   : > { %v714_v54 = vpack.c.bf16 %v2021_v52, %v2020_v48  ;;  %v722_v55 = vpack.c.bf16 %v2037_v53, %v2036_v49  ;;  %v617_v56 = vpop.f32.mrb[11].mxu0  ;;  %v681_v57 = vpop.f32.mrb[11].mxu1 }
 0x177   : > { %v713_v58 = vpack.c.bf16 %v617_v56, %v614_v50  ;;  %v721_v59 = vpack.c.bf16 %v681_v57, %v678_v51 }
 0x178   : > { %734 = vst [vmem:[#allocation2 + $0x28] sm:$0xff] %v714_v54  ;;  %742 = vst [vmem:[#allocation2 + $0x68] sm:$0xff] %v722_v55 }
 0x179   : > { %733 = vst [vmem:[#allocation2 + $0x20] sm:$0xff] %v713_v58  ;;  %741 = vst [vmem:[#allocation2 + $0x60] sm:$0xff] %v721_v59 }
 0x17b   : > { %v2024_v60 = vpop.f32.mrb[12].mxu0  ;;  %v2040_v61 = vpop.f32.mrb[12].mxu1 }
 0x17c   : > { %v630_v62 = vpop.f32.mrb[13].mxu0  ;;  %v694_v63 = vpop.f32.mrb[13].mxu1 }
 0x17d   : > { %v2025_v0 = vpop.f32.mrb[14].mxu0  ;;  %v2041_v1 = vpop.f32.mrb[14].mxu1 }
 0x17e   : > { %v716_v2 = vpack.c.bf16 %v2025_v0, %v2024_v60  ;;  %v724_v3 = vpack.c.bf16 %v2041_v1, %v2040_v61  ;;  %v633_v4 = vpop.f32.mrb[15].mxu0  ;;  %v697_v5 = vpop.f32.mrb[15].mxu1 }
 0x17f   : > { %v715_v6 = vpack.c.bf16 %v633_v4, %v630_v62  ;;  %v723_v7 = vpack.c.bf16 %v697_v5, %v694_v63 }
 0x180   : > { %736 = vst [vmem:[#allocation2 + $0x38] sm:$0xff] %v716_v2  ;;  %744 = vst [vmem:[#allocation2 + $0x78] sm:$0xff] %v724_v3 }
 0x181   : > { %735 = vst [vmem:[#allocation2 + $0x30] sm:$0xff] %v715_v6  ;;  %743 = vst [vmem:[#allocation2 + $0x70] sm:$0xff] %v723_v7 }
 0x182 PF: > { %p1703_p11 = scmp.ne.s32.totalorder %s2403_s21, 1 }
 0x183   : > { %v793_v8 = vld [vmem:[#allocation2 + $0x40] sm:$0xff] (!%p1703_p11)  ;;  %v794_v10 = vld [vmem:[#allocation2 + $0x48] sm:$0xff] (!%p1703_p11)  ;;  %v795_v12 = vld [vmem:[#allocation2 + $0x50] sm:$0xff] (!%p1703_p11) }
 0x184   : > { %747 = sbr.rel (%p1703_p11) target bundleno = 965 (0x3c5), region = 68  ;;  %v785_v9 = vld [vmem:[#allocation2] sm:$0xff] (!%p1703_p11)  ;;  %1746 = vmatprep.subr.bf16.mxu0 (!%p1703_p11), %v793_v8  ;;  %2106 = vmatprep.subr.bf16.mxu1 (!%p1703_p11), %v793_v8  ;;  %v786_v11 = vld [vmem:[#allocation2 + $0x8] sm:$0xff] (!%p1703_p11)  ;;  %v787_v14 = vld [vmem:[#allocation2 + $0x10] sm:$0xff] (!%p1703_p11) }
 0x185   : > { %1747 = vmatpush3.bf16.msra.mxu0 (!%p1703_p11), %v785_v9  ;;  %2114 = vmatpush3.bf16.msra.mxu1 (!%p1703_p11), %v785_v9  ;;  %v754_v13 = vld [vmem:[#allocation4 + $0x8] sm:$0xff] (!%p1703_p11)  ;;  %v796_v15 = vld [vmem:[#allocation2 + $0x58] sm:$0xff] (!%p1703_p11)  ;;  %v797_v17 = vld [vmem:[#allocation2 + $0x60] sm:$0xff] (!%p1703_p11) }
 0x186   : > { %1748 = vmatprep.subr.bf16.mxu0 (!%p1703_p11), %v794_v10  ;;  %2107 = vmatprep.subr.bf16.mxu1 (!%p1703_p11), %v794_v10  ;;  %v788_v16 = vld [vmem:[#allocation2 + $0x18] sm:$0xff] (!%p1703_p11)  ;;  %v778_v18 = vld [vmem:[#allocation4 + $0xc8] sm:$0xff] (!%p1703_p11)  ;;  %v789_v19 = vld [vmem:[#allocation2 + $0x20] sm:$0xff] (!%p1703_p11) }
 0x187   : > { %840 = vmatprep.mubr.bf16.mxu0 (!%p1703_p11), %v754_v13  ;;  %936 = vmatprep.mubr.bf16.mxu1 (!%p1703_p11), %v778_v18  ;;  %v798_v20 = vld [vmem:[#allocation2 + $0x68] sm:$0xff] (!%p1703_p11)  ;;  %v800_v24 = vld [vmem:[#allocation2 + $0x78] sm:$0xff] (!%p1703_p11)  ;;  %v2255_v26 = vld [vmem:[#allocation11] sm:$0xff] (!%p1703_p11)  }
 0x188   : > { %v790_v21 = vld [vmem:[#allocation2 + $0x28] sm:$0xff] (!%p1703_p11)  ;;  %v799_v22 = vld [vmem:[#allocation2 + $0x70] sm:$0xff] (!%p1703_p11)  ;;  %v792_v25 = vld [vmem:[#allocation2 + $0x38] sm:$0xff] (!%p1703_p11) }
 0x189   : > { %1749 = vmatpush3.bf16.msra.mxu0 (!%p1703_p11), %v786_v11  ;;  %2115 = vmatpush3.bf16.msra.mxu1 (!%p1703_p11), %v786_v11  ;;  %v791_v23 = vld [vmem:[#allocation2 + $0x30] sm:$0xff] (!%p1703_p11)  ;;  %v753_v27 = vld [vmem:[#allocation4] sm:$0xff] (!%p1703_p11)  ;;  %v756_v28 = vld [vmem:[#allocation4 + $0x18] sm:$0xff] (!%p1703_p11) }
 0x18a   : > { %1750 = vmatprep.subr.bf16.mxu0 (!%p1703_p11), %v795_v12  ;;  %2108 = vmatprep.subr.bf16.mxu1 (!%p1703_p11), %v795_v12  ;;  %v777_v29 = vld [vmem:[#allocation4 + $0xc0] sm:$0xff] (!%p1703_p11)  ;;  %v780_v30 = vld [vmem:[#allocation4 + $0xd8] sm:$0xff] (!%p1703_p11)  ;;  %v2256_v31 = vld [vmem:[#allocation11 + $0x8] sm:$0xff] (!%p1703_p11)  }
 0x18b   : > { %v2257_v32 = vld [vmem:[#allocation11 + $0x10] sm:$0xff]   ;;  %v758_v34 = vld [vmem:[#allocation4 + $0x28] sm:$0xff]  ;;  %v757_v37 = vld [vmem:[#allocation4 + $0x20] sm:$0xff] }
 0x18c   : > { %v755_v33 = vld [vmem:[#allocation4 + $0x10] sm:$0xff]  ;;  %v782_v36 = vld [vmem:[#allocation4 + $0xe8] sm:$0xff]  ;;  %v760_v38 = vld [vmem:[#allocation4 + $0x38] sm:$0xff] }
 0x18d   : > { %1751 = vmatpush3.bf16.msra.mxu0 %v787_v14  ;;  %2116 = vmatpush3.bf16.msra.mxu1 %v787_v14  ;;  %v779_v35 = vld [vmem:[#allocation4 + $0xd0] sm:$0xff]  ;;  %v781_v39 = vld [vmem:[#allocation4 + $0xe0] sm:$0xff]  ;;  %v784_v40 = vld [vmem:[#allocation4 + $0xf8] sm:$0xff] }
 0x18e   : > { %1752 = vmatprep.subr.bf16.mxu0 %v796_v15  ;;  %2109 = vmatprep.subr.bf16.mxu1 %v796_v15  ;;  %v759_v41 = vld [vmem:[#allocation4 + $0x30] sm:$0xff]  ;;  %v762_v42 = vld [vmem:[#allocation4 + $0x48] sm:$0xff]  ;;  %v761_v44 = vld [vmem:[#allocation4 + $0x40] sm:$0xff] }
 0x18f   : > { %v783_v43 = vld [vmem:[#allocation4 + $0xf0] sm:$0xff]  ;;  %v764_v45 = vld [vmem:[#allocation4 + $0x58] sm:$0xff]  ;;  %v766_v47 = vld [vmem:[#allocation4 + $0x68] sm:$0xff] }
 0x190   : > { %v763_v46 = vld [vmem:[#allocation4 + $0x50] sm:$0xff]  ;;  %v765_v48 = vld [vmem:[#allocation4 + $0x60] sm:$0xff]  ;;  %v768_v49 = vld [vmem:[#allocation4 + $0x78] sm:$0xff] }
 0x191   : > { %1753 = vmatpush3.bf16.msra.mxu0 %v788_v16  ;;  %2117 = vmatpush3.bf16.msra.mxu1 %v788_v16  ;;  %v767_v50 = vld [vmem:[#allocation4 + $0x70] sm:$0xff]  ;;  %v770_v51 = vld [vmem:[#allocation4 + $0x88] sm:$0xff]  ;;  %v769_v52 = vld [vmem:[#allocation4 + $0x80] sm:$0xff] }
 0x192   : > { %1754 = vmatprep.subr.bf16.mxu0 %v797_v17  ;;  %2110 = vmatprep.subr.bf16.mxu1 %v797_v17  ;;  %v772_v53 = vld [vmem:[#allocation4 + $0x98] sm:$0xff]  ;;  %v771_v54 = vld [vmem:[#allocation4 + $0x90] sm:$0xff]  ;;  %v774_v55 = vld [vmem:[#allocation4 + $0xa8] sm:$0xff] }
 0x193   : > { %v773_v56 = vld [vmem:[#allocation4 + $0xa0] sm:$0xff]  ;;  %v776_v57 = vld [vmem:[#allocation4 + $0xb8] sm:$0xff]  ;;  %v775_v59 = vld [vmem:[#allocation4 + $0xb0] sm:$0xff] }
 0x194   : > { %v2258_v58 = vld [vmem:[#allocation11 + $0x18] sm:$0xff]   ;;  %v2259_v60 = vld [vmem:[#allocation11 + $0x20] sm:$0xff]   ;;  %v2260_v61 = vld [vmem:[#allocation11 + $0x28] sm:$0xff]  }
 0x195   : > { %1755 = vmatpush3.bf16.msra.mxu0 %v789_v19  ;;  %2118 = vmatpush3.bf16.msra.mxu1 %v789_v19  ;;  %v2261_v62 = vld [vmem:[#allocation11 + $0x30] sm:$0xff]   ;;  %v2262_v63 = vld [vmem:[#allocation11 + $0x38] sm:$0xff]   ;;  %v2623_v1 = vld [vmem:[%s2745_s2] ss:$0 sm:$0xff] }
 0x196   : > { %1756 = vmatprep.subr.bf16.mxu0 %v798_v20  ;;  %2111 = vmatprep.subr.bf16.mxu1 %v798_v20 }
 0x199   : > { %1757 = vmatpush3.bf16.msra.mxu0 %v790_v21  ;;  %2119 = vmatpush3.bf16.msra.mxu1 %v790_v21 }
 0x19a   : > { %1758 = vmatprep.subr.bf16.mxu0 %v799_v22  ;;  %2112 = vmatprep.subr.bf16.mxu1 %v799_v22 }
 0x19d   : > { %1759 = vmatpush3.bf16.msra.mxu0 %v791_v23  ;;  %2120 = vmatpush3.bf16.msra.mxu1 %v791_v23 }
 0x19e   : > { %1760 = vmatprep.subr.bf16.mxu0 %v800_v24  ;;  %2113 = vmatprep.subr.bf16.mxu1 %v800_v24 }
 0x1a1   : > { %1761 = vmatpush3.bf16.msra.mxu0 %v792_v25  ;;  %2121 = vmatpush3.bf16.msra.mxu1 %v792_v25 }
 0x1a2   : > { %2042 = vmatprep.subr.bf16.mxu1 %v2255_v26 }
 0x1a4   : > { %841 = vmatmul.mubr.bf16.vlgmr.msra.gmra.mrb[0].mxu0 %v753_v27  ;;  %937 = vmatmul.mubr.bf16.vlgmr.msra.gmra.mrb[0].mxu1 %v777_v29 }
 0x1a5   : > { %848 = vmatprep.mubr.bf16.mxu0 %v756_v28  ;;  %944 = vmatprep.mubr.bf16.mxu1 %v780_v30 }
 0x1a6   : > { %2043 = vmatpush3.bf16.msra.mxu1 %v2255_v26 }
 0x1a7   : > { %2044 = vmatprep.subr.bf16.mxu1 %v2256_v31 }
 0x1aa   : > { %2045 = vmatpush3.bf16.msra.mxu1 %v2256_v31 }
 0x1ab   : > { %2046 = vmatprep.subr.bf16.mxu1 %v2257_v32 }
 0x1ac   : > { %849 = vmatmul.mubr.bf16.gmra.mrb[4].mxu0 %v755_v33  ;;  %945 = vmatmul.mubr.bf16.gmra.mrb[4].mxu1 %v779_v35 }
 0x1ad   : > { %856 = vmatprep.mubr.bf16.mxu0 %v758_v34  ;;  %952 = vmatprep.mubr.bf16.mxu1 %v782_v36 }
 0x1ae   : > { %2047 = vmatpush3.bf16.msra.mxu1 %v2257_v32 }
 0x1af   : > { %2048 = vmatprep.subr.bf16.mxu1 %v2258_v58 }
 0x1b2   : > { %2049 = vmatpush3.bf16.msra.mxu1 %v2258_v58 }
 0x1b3   : > { %2050 = vmatprep.subr.bf16.mxu1 %v2259_v60 }
 0x1b4   : > { %857 = vmatmul.mubr.bf16.gmra.mrb[8].mxu0 %v757_v37  ;;  %953 = vmatmul.mubr.bf16.gmra.mrb[8].mxu1 %v781_v39 }
 0x1b5   : > { %864 = vmatprep.mubr.bf16.mxu0 %v760_v38  ;;  %960 = vmatprep.mubr.bf16.mxu1 %v784_v40 }
 0x1b6   : > { %2051 = vmatpush3.bf16.msra.mxu1 %v2259_v60 }
 0x1b7   : > { %2052 = vmatprep.subr.bf16.mxu1 %v2260_v61 }
 0x1ba   : > { %2053 = vmatpush3.bf16.msra.mxu1 %v2260_v61 }
 0x1bb   : > { %2054 = vmatprep.subr.bf16.mxu1 %v2261_v62 }
 0x1bc   : > { %865 = vmatmul.mubr.bf16.gmra.mrb[12].mxu0 %v759_v41  ;;  %961 = vmatmul.mubr.bf16.gmra.mrb[12].mxu1 %v783_v43 }
 0x1bd   : > { %872 = vmatprep.mubr.bf16.mxu0 %v762_v42 }
 0x1be   : > { %2055 = vmatpush3.bf16.msra.mxu1 %v2261_v62 }
 0x1bf   : > { %2056 = vmatprep.subr.bf16.mxu1 %v2262_v63 }
 0x1c2   : > { %2057 = vmatpush3.bf16.msra.mxu1 %v2262_v63 }
 0x1c4   : > { %873 = vmatmul.mubr.bf16.gmra.mrb[16].mxu0 %v761_v44 }
 0x1c5   : > { %880 = vmatprep.mubr.bf16.mxu0 %v764_v45 }
 0x1cc   : > { %881 = vmatmul.mubr.bf16.gmra.mrb[20].mxu0 %v763_v46 }
 0x1cd   : > { %888 = vmatprep.mubr.bf16.mxu0 %v766_v47 }
 0x1d4   : > { %889 = vmatmul.mubr.bf16.gmra.mrb[24].mxu0 %v765_v48 }
 0x1d5   : > { %896 = vmatprep.mubr.bf16.mxu0 %v768_v49 }
 0x1dc   : > { %897 = vmatmul.mubr.bf16.gmra.mrb[28].mxu0 %v767_v50 }
 0x1dd   : > { %904 = vmatprep.mubr.bf16.mxu0 %v770_v51 }
 0x1e4   : > { %905 = vmatmul.mubr.bf16.gmra.mrb[32].mxu0 %v769_v52 }
 0x1e5   : > { %912 = vmatprep.mubr.bf16.mxu0 %v772_v53 }
 0x1ec   : > { %913 = vmatmul.mubr.bf16.gmra.mrb[36].mxu0 %v771_v54 }
 0x1ed   : > { %920 = vmatprep.mubr.bf16.mxu0 %v774_v55 }
 0x1f4   : > { %921 = vmatmul.mubr.bf16.gmra.mrb[40].mxu0 %v773_v56 }
 0x1f5   : > { %928 = vmatprep.mubr.bf16.mxu0 %v776_v57 }
 0x1fc   : > { %929 = vmatmul.mubr.bf16.gmra.mrb[44].mxu0 %v775_v59 }
 0x277   : > { %v1762_v0 = vpop.f32.mrb[0].mxu0  ;;  %v1834_v3 = vpop.f32.mrb[0].mxu1 }
 0x278   : > { %v1763_v2 = vpop.f32.mrb[1].mxu0  ;;  %v1835_v6 = vpop.f32.mrb[1].mxu1 }
 0x279   : > { %v1764_v4 = vadd.f32 %v1763_v2, %v1762_v0  ;;  %v1765_v5 = vpop.f32.mrb[2].mxu0  ;;  %v1836_v8 = vadd.f32 %v1835_v6, %v1834_v3  ;;  %v1837_v9 = vpop.f32.mrb[2].mxu1 }
 0x27a   : > { %v1766_v7 = vpop.f32.mrb[3].mxu0  ;;  %v1838_v12 = vpop.f32.mrb[3].mxu1 }
 0x27b   : > { %v843_v10 = vadd.f32 %v1764_v4, %v2623_v1  ;;  %v1767_v11 = vadd.f32 %v1766_v7, %v1765_v5  ;;  %v939_v13 = vadd.f32 %v1836_v8, %v2623_v1  ;;  %v1839_v14 = vadd.f32 %v1838_v12, %v1837_v9 }
 0x27d   : > { %v846_v15 = vadd.f32 %v1767_v11, %v2623_v1  ;;  %v993_v16 = vmax.f32 %v939_v13, 0.0  ;;  %v942_v17 = vadd.f32 %v1839_v14, %v2623_v1  ;;  %v969_v18 = vmax.f32 %v843_v10, 0.0 }
 0x27f   : > { %v970_v19 = vmax.f32 %v846_v15, 0.0  ;;  %v1768_v20 = vpop.f32.mrb[4].mxu0  ;;  %v994_v22 = vmax.f32 %v942_v17, 0.0  ;;  %v1840_v23 = vpop.f32.mrb[4].mxu1 }
 0x280   : > { %v1769_v21 = vpop.f32.mrb[5].mxu0  ;;  %v1841_v27 = vpop.f32.mrb[5].mxu1 }
 0x281   : > { %v1770_v24 = vadd.f32 %v1769_v21, %v1768_v20  ;;  %v1771_v25 = vpop.f32.mrb[6].mxu0  ;;  %v1001_v26 = vpack.c.bf16 %v970_v19, %v969_v18  ;;  %v1842_v29 = vadd.f32 %v1841_v27, %v1840_v23  ;;  %v1843_v30 = vpop.f32.mrb[6].mxu1  ;;  %v2629_v31 = vpack.c.bf16 %v994_v22, %v993_v16 }
 0x282   : > { %v1772_v28 = vpop.f32.mrb[7].mxu0  ;;  %v1844_v34 = vpop.f32.mrb[7].mxu1 }
 0x283   : > { %v851_v32 = vadd.f32 %v1770_v24, %v2623_v1  ;;  %v1773_v33 = vadd.f32 %v1772_v28, %v1771_v25  ;;  %2058 = vmatprep.mubr.bf16.mxu1 %v1001_v26  ;;  %v947_v35 = vadd.f32 %v1842_v29, %v2623_v1  ;;  %v1845_v36 = vadd.f32 %v1844_v34, %v1843_v30 }
 0x285   : > { %v854_v37 = vadd.f32 %v1773_v33, %v2623_v1  ;;  %v995_v38 = vmax.f32 %v947_v35, 0.0  ;;  %v950_v39 = vadd.f32 %v1845_v36, %v2623_v1  ;;  %v971_v40 = vmax.f32 %v851_v32, 0.0 }
 0x287   : > { %v972_v41 = vmax.f32 %v854_v37, 0.0  ;;  %v1774_v42 = vpop.f32.mrb[8].mxu0  ;;  %v996_v44 = vmax.f32 %v950_v39, 0.0  ;;  %v1846_v45 = vpop.f32.mrb[8].mxu1 }
 0x288   : > { %v1775_v43 = vpop.f32.mrb[9].mxu0  ;;  %v1847_v49 = vpop.f32.mrb[9].mxu1 }
 0x289   : > { %v1002_v46 = vpack.c.bf16 %v972_v41, %v971_v40  ;;  %v1776_v47 = vadd.f32 %v1775_v43, %v1774_v42  ;;  %v1777_v48 = vpop.f32.mrb[10].mxu0  ;;  %v1848_v51 = vadd.f32 %v1847_v49, %v1846_v45  ;;  %v1849_v52 = vpop.f32.mrb[10].mxu1  ;;  %v2635_v53 = vpack.c.bf16 %v996_v44, %v995_v38 }
 0x28a   : > { %v1778_v50 = vpop.f32.mrb[11].mxu0  ;;  %v1850_v56 = vpop.f32.mrb[11].mxu1 }
 0x28b   : > { %v859_v54 = vadd.f32 %v1776_v47, %v2623_v1  ;;  %v1779_v55 = vadd.f32 %v1778_v50, %v1777_v48  ;;  %2059 = vmatmul.mubr.bf16.vlgmr.msra.gmra.mrb[16].mxu1 %v1002_v46  ;;  %v955_v57 = vadd.f32 %v1848_v51, %v2623_v1  ;;  %v1851_v58 = vadd.f32 %v1850_v56, %v1849_v52 }
 0x28d   : > { %v862_v59 = vadd.f32 %v1779_v55, %v2623_v1  ;;  %v997_v60 = vmax.f32 %v955_v57, 0.0  ;;  %v958_v61 = vadd.f32 %v1851_v58, %v2623_v1  ;;  %v973_v62 = vmax.f32 %v859_v54, 0.0 }
 0x28f   : > { %v974_v63 = vmax.f32 %v862_v59, 0.0  ;;  %v1780_v0 = vpop.f32.mrb[12].mxu0  ;;  %v998_v3 = vmax.f32 %v958_v61, 0.0  ;;  %v1852_v4 = vpop.f32.mrb[12].mxu1 }
 0x290   : > { %v1781_v2 = vpop.f32.mrb[13].mxu0  ;;  %v1853_v8 = vpop.f32.mrb[13].mxu1 }
 0x291   : > { %v1782_v5 = vadd.f32 %v1781_v2, %v1780_v0  ;;  %v1783_v6 = vpop.f32.mrb[14].mxu0  ;;  %v1003_v7 = vpack.c.bf16 %v974_v63, %v973_v62  ;;  %v1854_v10 = vadd.f32 %v1853_v8, %v1852_v4  ;;  %v1855_v11 = vpop.f32.mrb[14].mxu1  ;;  %v2641_v12 = vpack.c.bf16 %v998_v3, %v997_v60 }
 0x292   : > { %v1784_v9 = vpop.f32.mrb[15].mxu0  ;;  %v1856_v15 = vpop.f32.mrb[15].mxu1 }
 0x293   : > { %v867_v13 = vadd.f32 %v1782_v5, %v2623_v1  ;;  %v1785_v14 = vadd.f32 %v1784_v9, %v1783_v6  ;;  %2062 = vmatprep.mubr.bf16.mxu1 %v1003_v7  ;;  %v963_v16 = vadd.f32 %v1854_v10, %v2623_v1  ;;  %v1857_v17 = vadd.f32 %v1856_v15, %v1855_v11 }
 0x295   : > { %v870_v18 = vadd.f32 %v1785_v14, %v2623_v1  ;;  %v999_v19 = vmax.f32 %v963_v16, 0.0  ;;  %v966_v20 = vadd.f32 %v1857_v17, %v2623_v1  ;;  %v975_v21 = vmax.f32 %v867_v13, 0.0 }
 0x297   : > { %v976_v22 = vmax.f32 %v870_v18, 0.0  ;;  %v1786_v23 = vpop.f32.mrb[16].mxu0  ;;  %v1000_v25 = vmax.f32 %v966_v20, 0.0 }
 0x298   : > { %v1787_v24 = vpop.f32.mrb[17].mxu0 }
 0x299   : > { %v1788_v26 = vadd.f32 %v1787_v24, %v1786_v23  ;;  %v1789_v27 = vpop.f32.mrb[18].mxu0  ;;  %v1004_v28 = vpack.c.bf16 %v976_v22, %v975_v21  ;;  %v2647_v30 = vpack.c.bf16 %v1000_v25, %v999_v19 }
 0x29a   : > { %v1790_v29 = vpop.f32.mrb[19].mxu0 }
 0x29b   : > { %v875_v32 = vadd.f32 %v1788_v26, %v2623_v1  ;;  %v1791_v33 = vadd.f32 %v1790_v29, %v1789_v27  ;;  %2063 = vmatmul.mubr.bf16.gmra.mrb[20].mxu1 %v1004_v28 }
 0x29d   : > { %v878_v34 = vadd.f32 %v1791_v33, %v2623_v1  ;;  %v977_v35 = vmax.f32 %v875_v32, 0.0 }
 0x29f   : > { %v978_v36 = vmax.f32 %v878_v34, 0.0  ;;  %v1792_v37 = vpop.f32.mrb[20].mxu0 }
 0x2a0   : > { %v1793_v38 = vpop.f32.mrb[21].mxu0 }
 0x2a1   : > { %v1794_v39 = vadd.f32 %v1793_v38, %v1792_v37  ;;  %v1795_v40 = vpop.f32.mrb[22].mxu0  ;;  %v1005_v41 = vpack.c.bf16 %v978_v36, %v977_v35 }
 0x2a2   : > { %v1796_v42 = vpop.f32.mrb[23].mxu0 }
 0x2a3   : > { %v883_v43 = vadd.f32 %v1794_v39, %v2623_v1  ;;  %v1797_v44 = vadd.f32 %v1796_v42, %v1795_v40  ;;  %2066 = vmatprep.mubr.bf16.mxu1 %v1005_v41 }
 0x2a5   : > { %v886_v45 = vadd.f32 %v1797_v44, %v2623_v1  ;;  %v979_v46 = vmax.f32 %v883_v43, 0.0 }
 0x2a7   : > { %v980_v47 = vmax.f32 %v886_v45, 0.0  ;;  %v1798_v48 = vpop.f32.mrb[24].mxu0 }
 0x2a8   : > { %v1799_v49 = vpop.f32.mrb[25].mxu0 }
 0x2a9   : > { %v1800_v50 = vadd.f32 %v1799_v49, %v1798_v48  ;;  %v1801_v51 = vpop.f32.mrb[26].mxu0  ;;  %v1006_v52 = vpack.c.bf16 %v980_v47, %v979_v46 }
 0x2aa   : > { %v1802_v54 = vpop.f32.mrb[27].mxu0 }
 0x2ab   : > { %v891_v55 = vadd.f32 %v1800_v50, %v2623_v1  ;;  %v1803_v56 = vadd.f32 %v1802_v54, %v1801_v51  ;;  %2067 = vmatmul.mubr.bf16.gmra.mrb[24].mxu1 %v1006_v52 }
 0x2ad   : > { %v894_v57 = vadd.f32 %v1803_v56, %v2623_v1  ;;  %v981_v58 = vmax.f32 %v891_v55, 0.0 }
 0x2af   : > { %v982_v59 = vmax.f32 %v894_v57, 0.0  ;;  %v1804_v60 = vpop.f32.mrb[28].mxu0 }
 0x2b0   : > { %v1805_v61 = vpop.f32.mrb[29].mxu0 }
 0x2b1   : > { %v1806_v62 = vadd.f32 %v1805_v61, %v1804_v60  ;;  %v1807_v63 = vpop.f32.mrb[30].mxu0  ;;  %v1007_v0 = vpack.c.bf16 %v982_v59, %v981_v58 }
 0x2b2   : > { %v1808_v2 = vpop.f32.mrb[31].mxu0 }
 0x2b3   : > { %v899_v3 = vadd.f32 %v1806_v62, %v2623_v1  ;;  %v1809_v4 = vadd.f32 %v1808_v2, %v1807_v63  ;;  %2070 = vmatprep.mubr.bf16.mxu1 %v1007_v0 }
 0x2b5   : > { %v902_v5 = vadd.f32 %v1809_v4, %v2623_v1  ;;  %v983_v6 = vmax.f32 %v899_v3, 0.0 }
 0x2b7   : > { %v984_v7 = vmax.f32 %v902_v5, 0.0  ;;  %v1810_v8 = vpop.f32.mrb[32].mxu0 }
 0x2b8   : > { %v1811_v9 = vpop.f32.mrb[33].mxu0 }
 0x2b9   : > { %v1812_v10 = vadd.f32 %v1811_v9, %v1810_v8  ;;  %v1813_v11 = vpop.f32.mrb[34].mxu0  ;;  %v1008_v13 = vpack.c.bf16 %v984_v7, %v983_v6 }
 0x2ba   : > { %v1814_v14 = vpop.f32.mrb[35].mxu0 }
 0x2bb   : > { %v907_v15 = vadd.f32 %v1812_v10, %v2623_v1  ;;  %v1815_v16 = vadd.f32 %v1814_v14, %v1813_v11  ;;  %2071 = vmatmul.mubr.bf16.gmra.mrb[28].mxu1 %v1008_v13 }
 0x2bd   : > { %v910_v17 = vadd.f32 %v1815_v16, %v2623_v1  ;;  %v985_v18 = vmax.f32 %v907_v15, 0.0 }
 0x2bf   : > { %v986_v19 = vmax.f32 %v910_v17, 0.0  ;;  %v1816_v20 = vpop.f32.mrb[36].mxu0 }
 0x2c0   : > { %v1817_v21 = vpop.f32.mrb[37].mxu0 }
 0x2c1   : > { %v1818_v22 = vadd.f32 %v1817_v21, %v1816_v20  ;;  %v1819_v23 = vpop.f32.mrb[38].mxu0  ;;  %v1009_v24 = vpack.c.bf16 %v986_v19, %v985_v18 }
 0x2c2   : > { %v1820_v25 = vpop.f32.mrb[39].mxu0 }
 0x2c3   : > { %v915_v26 = vadd.f32 %v1818_v22, %v2623_v1  ;;  %v1821_v27 = vadd.f32 %v1820_v25, %v1819_v23  ;;  %2074 = vmatprep.mubr.bf16.mxu1 %v1009_v24 }
 0x2c5   : > { %v918_v28 = vadd.f32 %v1821_v27, %v2623_v1  ;;  %v987_v29 = vmax.f32 %v915_v26, 0.0 }
 0x2c7   : > { %v988_v32 = vmax.f32 %v918_v28, 0.0  ;;  %v1822_v33 = vpop.f32.mrb[40].mxu0 }
 0x2c8   : > { %v1823_v34 = vpop.f32.mrb[41].mxu0 }
 0x2c9   : > { %v1824_v35 = vadd.f32 %v1823_v34, %v1822_v33  ;;  %v1825_v36 = vpop.f32.mrb[42].mxu0  ;;  %v1010_v37 = vpack.c.bf16 %v988_v32, %v987_v29 }
 0x2ca   : > { %v1826_v38 = vpop.f32.mrb[43].mxu0 }
 0x2cb   : > { %v923_v39 = vadd.f32 %v1824_v35, %v2623_v1  ;;  %v1827_v40 = vadd.f32 %v1826_v38, %v1825_v36  ;;  %2075 = vmatmul.mubr.bf16.gmra.mrb[32].mxu1 %v1010_v37 }
 0x2cd   : > { %v926_v41 = vadd.f32 %v1827_v40, %v2623_v1  ;;  %v989_v42 = vmax.f32 %v923_v39, 0.0 }
 0x2cf   : > { %v990_v43 = vmax.f32 %v926_v41, 0.0  ;;  %v1828_v44 = vpop.f32.mrb[44].mxu0 }
 0x2d0   : > { %v1829_v45 = vpop.f32.mrb[45].mxu0 }
 0x2d1   : > { %v1830_v46 = vadd.f32 %v1829_v45, %v1828_v44  ;;  %v1831_v47 = vpop.f32.mrb[46].mxu0  ;;  %v1011_v48 = vpack.c.bf16 %v990_v43, %v989_v42 }
 0x2d2   : > { %v1832_v49 = vpop.f32.mrb[47].mxu0 }
 0x2d3   : > { %v931_v50 = vadd.f32 %v1830_v46, %v2623_v1  ;;  %v1833_v51 = vadd.f32 %v1832_v49, %v1831_v47  ;;  %2078 = vmatprep.mubr.bf16.mxu1 %v1011_v48 }
 0x2d5   : > { %v934_v52 = vadd.f32 %v1833_v51, %v2623_v1  ;;  %v991_v54 = vmax.f32 %v931_v50, 0.0 }
 0x2d7   : > { %v992_v55 = vmax.f32 %v934_v52, 0.0 }
 0x2d9   : > { %v1012_v56 = vpack.c.bf16 %v992_v55, %v991_v54 }
 0x2db   : > { %2079 = vmatmul.mubr.bf16.gmra.mrb[36].mxu1 %v1012_v56 }
 0x2dc   : > { %2082 = vmatprep.mubr.bf16.mxu1 %v2629_v31 }
 0x2e3   : > { %2083 = vmatmul.mubr.bf16.gmra.mrb[40].mxu1 %v2635_v53 }
 0x2e4   : > { %2086 = vmatprep.mubr.bf16.mxu1 %v2641_v12 }
 0x2eb   : > { %2087 = vmatmul.mubr.bf16.gmra.mrb[44].mxu1 %v2647_v30 }
 0x35e   : > { %v2060_v57 = vpop.f32.mrb[16].mxu1 }
 0x35f   : > { %v1115_v58 = vpop.f32.mrb[17].mxu1 }
 0x360   : > { %v2061_v59 = vpop.f32.mrb[18].mxu1 }
 0x361   : > { %v1243_v60 = vpack.c.bf16 %v2061_v59, %v2060_v57  ;;  %v1118_v61 = vpop.f32.mrb[19].mxu1 }
 0x362   : > { %v1242_v62 = vpack.c.bf16 %v1118_v61, %v1115_v58 }
 0x363   : > { %1261 = vst [vmem:[#allocation3 + $0x8] sm:$0xff] %v1243_v60 }
 0x364   : > { %1260 = vst [vmem:[#allocation3] sm:$0xff] %v1242_v62 }
 0x36e   : > { %v2064_v1 = vpop.f32.mrb[20].mxu1 }
 0x36f   : > { %v1131_v63 = vpop.f32.mrb[21].mxu1 }
 0x370   : > { %v2065_v0 = vpop.f32.mrb[22].mxu1 }
 0x371   : > { %v1245_v2 = vpack.c.bf16 %v2065_v0, %v2064_v1  ;;  %v1134_v3 = vpop.f32.mrb[23].mxu1 }
 0x372   : > { %v1244_v31 = vpack.c.bf16 %v1134_v3, %v1131_v63 }
 0x373   : > { %1263 = vst [vmem:[#allocation3 + $0x18] sm:$0xff] %v1245_v2 }
 0x374   : > { %1262 = vst [vmem:[#allocation3 + $0x10] sm:$0xff] %v1244_v31 }
 0x37e   : > { %v2068_v53 = vpop.f32.mrb[24].mxu1 }
 0x37f   : > { %v1147_v12 = vpop.f32.mrb[25].mxu1 }
 0x380   : > { %v2069_v4 = vpop.f32.mrb[26].mxu1 }
 0x381   : > { %v1247_v30 = vpack.c.bf16 %v2069_v4, %v2068_v53  ;;  %v1150_v5 = vpop.f32.mrb[27].mxu1 }
 0x382   : > { %v1246_v6 = vpack.c.bf16 %v1150_v5, %v1147_v12 }
 0x383   : > { %1265 = vst [vmem:[#allocation3 + $0x28] sm:$0xff] %v1247_v30 }
 0x384   : > { %1264 = vst [vmem:[#allocation3 + $0x20] sm:$0xff] %v1246_v6 }
 0x38e   : > { %v2072_v7 = vpop.f32.mrb[28].mxu1 }
 0x38f   : > { %v1163_v8 = vpop.f32.mrb[29].mxu1 }
 0x390   : > { %v2073_v9 = vpop.f32.mrb[30].mxu1 }
 0x391   : > { %v1249_v10 = vpack.c.bf16 %v2073_v9, %v2072_v7  ;;  %v1166_v11 = vpop.f32.mrb[31].mxu1 }
 0x392   : > { %v1248_v13 = vpack.c.bf16 %v1166_v11, %v1163_v8 }
 0x393   : > { %1267 = vst [vmem:[#allocation3 + $0x38] sm:$0xff] %v1249_v10 }
 0x394   : > { %1266 = vst [vmem:[#allocation3 + $0x30] sm:$0xff] %v1248_v13 }
 0x39e   : > { %v2076_v14 = vpop.f32.mrb[32].mxu1 }
 0x39f   : > { %v1179_v15 = vpop.f32.mrb[33].mxu1 }
 0x3a0   : > { %v2077_v16 = vpop.f32.mrb[34].mxu1 }
 0x3a1   : > { %v1251_v17 = vpack.c.bf16 %v2077_v16, %v2076_v14  ;;  %v1182_v18 = vpop.f32.mrb[35].mxu1 }
 0x3a2   : > { %v1250_v19 = vpack.c.bf16 %v1182_v18, %v1179_v15 }
 0x3a3   : > { %1269 = vst [vmem:[#allocation3 + $0x48] sm:$0xff] %v1251_v17 }
 0x3a4   : > { %1268 = vst [vmem:[#allocation3 + $0x40] sm:$0xff] %v1250_v19 }
 0x3ae   : > { %v2080_v20 = vpop.f32.mrb[36].mxu1 }
 0x3af   : > { %v1195_v21 = vpop.f32.mrb[37].mxu1 }
 0x3b0   : > { %v2081_v22 = vpop.f32.mrb[38].mxu1 }
 0x3b1   : > { %v1253_v23 = vpack.c.bf16 %v2081_v22, %v2080_v20  ;;  %v1198_v24 = vpop.f32.mrb[39].mxu1 }
 0x3b2   : > { %v1252_v25 = vpack.c.bf16 %v1198_v24, %v1195_v21 }
 0x3b3   : > { %1271 = vst [vmem:[#allocation3 + $0x58] sm:$0xff] %v1253_v23 }
 0x3b4   : > { %1270 = vst [vmem:[#allocation3 + $0x50] sm:$0xff] %v1252_v25 }
 0x3b6   : > { %v2084_v26 = vpop.f32.mrb[40].mxu1 }
 0x3b7   : > { %v1211_v27 = vpop.f32.mrb[41].mxu1 }
 0x3b8   : > { %v2085_v28 = vpop.f32.mrb[42].mxu1 }
 0x3b9   : > { %v1255_v29 = vpack.c.bf16 %v2085_v28, %v2084_v26  ;;  %v1214_v32 = vpop.f32.mrb[43].mxu1 }
 0x3ba   : > { %v1254_v33 = vpack.c.bf16 %v1214_v32, %v1211_v27 }
 0x3bb   : > { %1273 = vst [vmem:[#allocation3 + $0x68] sm:$0xff] %v1255_v29 }
 0x3bc   : > { %1272 = vst [vmem:[#allocation3 + $0x60] sm:$0xff] %v1254_v33 }
 0x3be   : > { %v2088_v34 = vpop.f32.mrb[44].mxu1 }
 0x3bf   : > { %v1227_v35 = vpop.f32.mrb[45].mxu1 }
 0x3c0   : > { %v2089_v36 = vpop.f32.mrb[46].mxu1 }
 0x3c1   : > { %v1257_v37 = vpack.c.bf16 %v2089_v36, %v2088_v34  ;;  %v1230_v38 = vpop.f32.mrb[47].mxu1 }
 0x3c2   : > { %v1256_v39 = vpack.c.bf16 %v1230_v38, %v1227_v35 }
 0x3c3   : > { %1275 = vst [vmem:[#allocation3 + $0x78] sm:$0xff] %v1257_v37 }
 0x3c4   : > { %1274 = vst [vmem:[#allocation3 + $0x70] sm:$0xff] %v1256_v39 }
 0x3c5 PF: > { %p1713_p12 = scmp.ne.s32.totalorder %s2403_s21, 2 }
 0x3c6   : > { %v1325_v40 = vld [vmem:[#allocation3 + $0x40] sm:$0xff] (!%p1713_p12)  ;;  %v1326_v42 = vld [vmem:[#allocation3 + $0x48] sm:$0xff] (!%p1713_p12)  ;;  %v1327_v44 = vld [vmem:[#allocation3 + $0x50] sm:$0xff] (!%p1713_p12) }
 0x3c7   : > { %1279 = sbr.rel (%p1713_p12) target bundleno = 1275 (0x4fb), region = 72  ;;  %v1317_v41 = vld [vmem:[#allocation3] sm:$0xff] (!%p1713_p12)  ;;  %1882 = vmatprep.subr.bf16.mxu0 (!%p1713_p12), %v1325_v40  ;;  %2122 = vmatprep.subr.bf16.mxu1 (!%p1713_p12), %v1325_v40  ;;  %v1318_v43 = vld [vmem:[#allocation3 + $0x8] sm:$0xff] (!%p1713_p12)  ;;  %v1319_v47 = vld [vmem:[#allocation3 + $0x10] sm:$0xff] (!%p1713_p12) }
 0x3c8   : > { %1883 = vmatpush3.bf16.msra.mxu0 (!%p1713_p12), %v1317_v41  ;;  %2130 = vmatpush3.bf16.msra.mxu1 (!%p1713_p12), %v1317_v41  ;;  %v1286_v45 = vld [vmem:[#allocation4 + $0x8] sm:$0xff] (!%p1713_p12)  ;;  %v1328_v48 = vld [vmem:[#allocation3 + $0x58] sm:$0xff] (!%p1713_p12)  ;;  %v1329_v50 = vld [vmem:[#allocation3 + $0x60] sm:$0xff] (!%p1713_p12) }
 0x3c9   : > { %1884 = vmatprep.subr.bf16.mxu0 (!%p1713_p12), %v1326_v42  ;;  %2123 = vmatprep.subr.bf16.mxu1 (!%p1713_p12), %v1326_v42  ;;  %v1302_v46 = vld [vmem:[#allocation4 + $0x88] sm:$0xff] (!%p1713_p12)  ;;  %v1320_v49 = vld [vmem:[#allocation3 + $0x18] sm:$0xff] (!%p1713_p12)  ;;  %v1321_v51 = vld [vmem:[#allocation3 + $0x20] sm:$0xff] (!%p1713_p12) }
 0x3ca   : > { %1372 = vmatprep.mubr.bf16.mxu0 (!%p1713_p12), %v1286_v45  ;;  %1436 = vmatprep.mubr.bf16.mxu1 (!%p1713_p12), %v1302_v46  ;;  %v1330_v52 = vld [vmem:[#allocation3 + $0x68] sm:$0xff] (!%p1713_p12)  ;;  %v1323_v56 = vld [vmem:[#allocation3 + $0x30] sm:$0xff] (!%p1713_p12)  ;;  %v1332_v57 = vld [vmem:[#allocation3 + $0x78] sm:$0xff] (!%p1713_p12) }
 0x3cb   : > { %v1322_v54 = vld [vmem:[#allocation3 + $0x28] sm:$0xff] (!%p1713_p12)  ;;  %v1331_v55 = vld [vmem:[#allocation3 + $0x70] sm:$0xff] (!%p1713_p12)  ;;  %v1324_v58 = vld [vmem:[#allocation3 + $0x38] sm:$0xff] (!%p1713_p12) }
 0x3cc   : > { %1885 = vmatpush3.bf16.msra.mxu0 (!%p1713_p12), %v1318_v43  ;;  %2131 = vmatpush3.bf16.msra.mxu1 (!%p1713_p12), %v1318_v43  ;;  %v1285_v59 = vld [vmem:[#allocation4] sm:$0xff] (!%p1713_p12)  ;;  %v1288_v61 = vld [vmem:[#allocation4 + $0x18] sm:$0xff] (!%p1713_p12)  ;;  %v1287_v1 = vld [vmem:[#allocation4 + $0x10] sm:$0xff] (!%p1713_p12) }
 0x3cd   : > { %1886 = vmatprep.subr.bf16.mxu0 (!%p1713_p12), %v1327_v44  ;;  %2124 = vmatprep.subr.bf16.mxu1 (!%p1713_p12), %v1327_v44  ;;  %v1301_v60 = vld [vmem:[#allocation4 + $0x80] sm:$0xff] (!%p1713_p12)  ;;  %v1304_v62 = vld [vmem:[#allocation4 + $0x98] sm:$0xff] (!%p1713_p12)  ;;  %v1303_v63 = vld [vmem:[#allocation4 + $0x90] sm:$0xff] (!%p1713_p12) }
 0x3ce   : > { %v1290_v0 = vld [vmem:[#allocation4 + $0x28] sm:$0xff]  ;;  %v1289_v3 = vld [vmem:[#allocation4 + $0x20] sm:$0xff]  ;;  %v1292_v53 = vld [vmem:[#allocation4 + $0x38] sm:$0xff] }
 0x3cf   : > { %v1306_v2 = vld [vmem:[#allocation4 + $0xa8] sm:$0xff]  ;;  %v1305_v31 = vld [vmem:[#allocation4 + $0xa0] sm:$0xff]  ;;  %v1308_v12 = vld [vmem:[#allocation4 + $0xb8] sm:$0xff] }
 0x3d0   : > { %1887 = vmatpush3.bf16.msra.mxu0 %v1319_v47  ;;  %2132 = vmatpush3.bf16.msra.mxu1 %v1319_v47  ;;  %v1291_v4 = vld [vmem:[#allocation4 + $0x30] sm:$0xff]  ;;  %v1294_v5 = vld [vmem:[#allocation4 + $0x48] sm:$0xff]  ;;  %v1293_v7 = vld [vmem:[#allocation4 + $0x40] sm:$0xff] }
 0x3d1   : > { %1888 = vmatprep.subr.bf16.mxu0 %v1328_v48  ;;  %2125 = vmatprep.subr.bf16.mxu1 %v1328_v48  ;;  %v1307_v30 = vld [vmem:[#allocation4 + $0xb0] sm:$0xff]  ;;  %v1310_v6 = vld [vmem:[#allocation4 + $0xc8] sm:$0xff]  ;;  %v1309_v8 = vld [vmem:[#allocation4 + $0xc0] sm:$0xff] }
 0x3d2   : > { %v1296_v9 = vld [vmem:[#allocation4 + $0x58] sm:$0xff]  ;;  %v1295_v11 = vld [vmem:[#allocation4 + $0x50] sm:$0xff]  ;;  %v1298_v14 = vld [vmem:[#allocation4 + $0x68] sm:$0xff] }
 0x3d3   : > { %v1312_v10 = vld [vmem:[#allocation4 + $0xd8] sm:$0xff]  ;;  %v1311_v13 = vld [vmem:[#allocation4 + $0xd0] sm:$0xff]  ;;  %v1314_v15 = vld [vmem:[#allocation4 + $0xe8] sm:$0xff] }
 0x3d4   : > { %1889 = vmatpush3.bf16.msra.mxu0 %v1320_v49  ;;  %2133 = vmatpush3.bf16.msra.mxu1 %v1320_v49  ;;  %v1297_v16 = vld [vmem:[#allocation4 + $0x60] sm:$0xff]  ;;  %v1300_v18 = vld [vmem:[#allocation4 + $0x78] sm:$0xff]  ;;  %v1299_v20 = vld [vmem:[#allocation4 + $0x70] sm:$0xff] }
 0x3d5   : > { %1890 = vmatprep.subr.bf16.mxu0 %v1329_v50  ;;  %2126 = vmatprep.subr.bf16.mxu1 %v1329_v50  ;;  %v1313_v17 = vld [vmem:[#allocation4 + $0xe0] sm:$0xff]  ;;  %v1316_v19 = vld [vmem:[#allocation4 + $0xf8] sm:$0xff]  ;;  %v1315_v21 = vld [vmem:[#allocation4 + $0xf0] sm:$0xff] }
 0x3d6   : > { %v2673_v24 = vld [vmem:[%s2747_s4] ss:$0 sm:$0xff] }
 0x3d8   : > { %1891 = vmatpush3.bf16.msra.mxu0 %v1321_v51  ;;  %2134 = vmatpush3.bf16.msra.mxu1 %v1321_v51 }
 0x3d9   : > { %1892 = vmatprep.subr.bf16.mxu0 %v1330_v52  ;;  %2127 = vmatprep.subr.bf16.mxu1 %v1330_v52 }
 0x3dc   : > { %1893 = vmatpush3.bf16.msra.mxu0 %v1322_v54  ;;  %2135 = vmatpush3.bf16.msra.mxu1 %v1322_v54 }
 0x3dd   : > { %1894 = vmatprep.subr.bf16.mxu0 %v1331_v55  ;;  %2128 = vmatprep.subr.bf16.mxu1 %v1331_v55 }
 0x3e0   : > { %1895 = vmatpush3.bf16.msra.mxu0 %v1323_v56  ;;  %2136 = vmatpush3.bf16.msra.mxu1 %v1323_v56 }
 0x3e1   : > { %1896 = vmatprep.subr.bf16.mxu0 %v1332_v57  ;;  %2129 = vmatprep.subr.bf16.mxu1 %v1332_v57 }
 0x3e4   : > { %1897 = vmatpush3.bf16.msra.mxu0 %v1324_v58  ;;  %2137 = vmatpush3.bf16.msra.mxu1 %v1324_v58 }
 0x3e7   : > { %1373 = vmatmul.mubr.bf16.vlgmr.msra.gmra.mrb[0].mxu0 %v1285_v59  ;;  %1437 = vmatmul.mubr.bf16.vlgmr.msra.gmra.mrb[0].mxu1 %v1301_v60 }
 0x3e8   : > { %1380 = vmatprep.mubr.bf16.mxu0 %v1288_v61  ;;  %1444 = vmatprep.mubr.bf16.mxu1 %v1304_v62 }
 0x3ef   : > { %1381 = vmatmul.mubr.bf16.gmra.mrb[4].mxu0 %v1287_v1  ;;  %1445 = vmatmul.mubr.bf16.gmra.mrb[4].mxu1 %v1303_v63 }
 0x3f0   : > { %1388 = vmatprep.mubr.bf16.mxu0 %v1290_v0  ;;  %1452 = vmatprep.mubr.bf16.mxu1 %v1306_v2 }
 0x3f7   : > { %1389 = vmatmul.mubr.bf16.gmra.mrb[8].mxu0 %v1289_v3  ;;  %1453 = vmatmul.mubr.bf16.gmra.mrb[8].mxu1 %v1305_v31 }
 0x3f8   : > { %1396 = vmatprep.mubr.bf16.mxu0 %v1292_v53  ;;  %1460 = vmatprep.mubr.bf16.mxu1 %v1308_v12 }
 0x3ff   : > { %1397 = vmatmul.mubr.bf16.gmra.mrb[12].mxu0 %v1291_v4  ;;  %1461 = vmatmul.mubr.bf16.gmra.mrb[12].mxu1 %v1307_v30 }
 0x400   : > { %1404 = vmatprep.mubr.bf16.mxu0 %v1294_v5  ;;  %1468 = vmatprep.mubr.bf16.mxu1 %v1310_v6 }
 0x407   : > { %1405 = vmatmul.mubr.bf16.gmra.mrb[16].mxu0 %v1293_v7  ;;  %1469 = vmatmul.mubr.bf16.gmra.mrb[16].mxu1 %v1309_v8 }
 0x408   : > { %1412 = vmatprep.mubr.bf16.mxu0 %v1296_v9  ;;  %1476 = vmatprep.mubr.bf16.mxu1 %v1312_v10 }
 0x40f   : > { %1413 = vmatmul.mubr.bf16.gmra.mrb[20].mxu0 %v1295_v11  ;;  %1477 = vmatmul.mubr.bf16.gmra.mrb[20].mxu1 %v1311_v13 }
 0x410   : > { %1420 = vmatprep.mubr.bf16.mxu0 %v1298_v14  ;;  %1484 = vmatprep.mubr.bf16.mxu1 %v1314_v15 }
 0x417   : > { %1421 = vmatmul.mubr.bf16.gmra.mrb[24].mxu0 %v1297_v16  ;;  %1485 = vmatmul.mubr.bf16.gmra.mrb[24].mxu1 %v1313_v17 }
 0x418   : > { %1428 = vmatprep.mubr.bf16.mxu0 %v1300_v18  ;;  %1492 = vmatprep.mubr.bf16.mxu1 %v1316_v19 }
 0x41f   : > { %1429 = vmatmul.mubr.bf16.gmra.mrb[28].mxu0 %v1299_v20  ;;  %1493 = vmatmul.mubr.bf16.gmra.mrb[28].mxu1 %v1315_v21 }
 0x4ba   : > { %v1898_v22 = vpop.f32.mrb[0].mxu0  ;;  %v1946_v23 = vpop.f32.mrb[0].mxu1 }
 0x4bb   : > { %v1899_v25 = vpop.f32.mrb[1].mxu0  ;;  %v1947_v26 = vpop.f32.mrb[1].mxu1 }
 0x4bc   : > { %v1900_v27 = vadd.f32 %v1899_v25, %v1898_v22  ;;  %v1948_v28 = vadd.f32 %v1947_v26, %v1946_v23  ;;  %v1901_v29 = vpop.f32.mrb[2].mxu0  ;;  %v1949_v32 = vpop.f32.mrb[2].mxu1 }
 0x4bd   : > { %v1902_v33 = vpop.f32.mrb[3].mxu0  ;;  %v1950_v34 = vpop.f32.mrb[3].mxu1 }
 0x4be   : > { %v1375_v35 = vadd.f32 %v1900_v27, %v2673_v24  ;;  %v1439_v36 = vadd.f32 %v1948_v28, %v2673_v24  ;;  %v1903_v37 = vadd.f32 %v1902_v33, %v1901_v29  ;;  %v1951_v38 = vadd.f32 %v1950_v34, %v1949_v32 }
 0x4c0   : > { %1501 = vst [vmem:[#allocation12] sm:$0xff] %v1375_v35  ;;  %1517 = vst [vmem:[#allocation12 + $0x80] sm:$0xff] %v1439_v36  ;;  %v1378_v39 = vadd.f32 %v1903_v37, %v2673_v24  ;;  %v1442_v40 = vadd.f32 %v1951_v38, %v2673_v24 }
 0x4c2   : > { %1502 = vst [vmem:[#allocation12 + $0x8] sm:$0xff] %v1378_v39  ;;  %1518 = vst [vmem:[#allocation12 + $0x88] sm:$0xff] %v1442_v40  ;;  %v1904_v41 = vpop.f32.mrb[4].mxu0  ;;  %v1952_v42 = vpop.f32.mrb[4].mxu1 }
 0x4c3   : > { %v1905_v43 = vpop.f32.mrb[5].mxu0  ;;  %v1953_v44 = vpop.f32.mrb[5].mxu1 }
 0x4c4   : > { %v1906_v45 = vadd.f32 %v1905_v43, %v1904_v41  ;;  %v1954_v46 = vadd.f32 %v1953_v44, %v1952_v42  ;;  %v1907_v47 = vpop.f32.mrb[6].mxu0  ;;  %v1955_v48 = vpop.f32.mrb[6].mxu1 }
 0x4c5   : > { %v1908_v49 = vpop.f32.mrb[7].mxu0  ;;  %v1956_v50 = vpop.f32.mrb[7].mxu1 }
 0x4c6   : > { %v1383_v51 = vadd.f32 %v1906_v45, %v2673_v24  ;;  %v1447_v52 = vadd.f32 %v1954_v46, %v2673_v24  ;;  %v1909_v54 = vadd.f32 %v1908_v49, %v1907_v47  ;;  %v1957_v55 = vadd.f32 %v1956_v50, %v1955_v48 }
 0x4c8   : > { %1503 = vst [vmem:[#allocation12 + $0x10] sm:$0xff] %v1383_v51  ;;  %1519 = vst [vmem:[#allocation12 + $0x90] sm:$0xff] %v1447_v52  ;;  %v1386_v56 = vadd.f32 %v1909_v54, %v2673_v24  ;;  %v1450_v57 = vadd.f32 %v1957_v55, %v2673_v24 }
 0x4ca   : > { %1504 = vst [vmem:[#allocation12 + $0x18] sm:$0xff] %v1386_v56  ;;  %1520 = vst [vmem:[#allocation12 + $0x98] sm:$0xff] %v1450_v57  ;;  %v1910_v58 = vpop.f32.mrb[8].mxu0  ;;  %v1958_v59 = vpop.f32.mrb[8].mxu1 }
 0x4cb   : > { %v1911_v60 = vpop.f32.mrb[9].mxu0  ;;  %v1959_v61 = vpop.f32.mrb[9].mxu1 }
 0x4cc   : > { %v1912_v62 = vadd.f32 %v1911_v60, %v1910_v58  ;;  %v1960_v1 = vadd.f32 %v1959_v61, %v1958_v59  ;;  %v1913_v63 = vpop.f32.mrb[10].mxu0  ;;  %v1961_v0 = vpop.f32.mrb[10].mxu1 }
 0x4cd   : > { %v1914_v2 = vpop.f32.mrb[11].mxu0  ;;  %v1962_v3 = vpop.f32.mrb[11].mxu1 }
 0x4ce   : > { %v1391_v31 = vadd.f32 %v1912_v62, %v2673_v24  ;;  %v1455_v53 = vadd.f32 %v1960_v1, %v2673_v24  ;;  %v1915_v12 = vadd.f32 %v1914_v2, %v1913_v63  ;;  %v1963_v4 = vadd.f32 %v1962_v3, %v1961_v0 }
 0x4d0   : > { %1505 = vst [vmem:[#allocation12 + $0x20] sm:$0xff] %v1391_v31  ;;  %1521 = vst [vmem:[#allocation12 + $0xa0] sm:$0xff] %v1455_v53  ;;  %v1394_v30 = vadd.f32 %v1915_v12, %v2673_v24  ;;  %v1458_v5 = vadd.f32 %v1963_v4, %v2673_v24 }
 0x4d2   : > { %1506 = vst [vmem:[#allocation12 + $0x28] sm:$0xff] %v1394_v30  ;;  %1522 = vst [vmem:[#allocation12 + $0xa8] sm:$0xff] %v1458_v5  ;;  %v1916_v6 = vpop.f32.mrb[12].mxu0  ;;  %v1964_v7 = vpop.f32.mrb[12].mxu1 }
 0x4d3   : > { %v1917_v8 = vpop.f32.mrb[13].mxu0  ;;  %v1965_v9 = vpop.f32.mrb[13].mxu1 }
 0x4d4   : > { %v1918_v10 = vadd.f32 %v1917_v8, %v1916_v6  ;;  %v1966_v11 = vadd.f32 %v1965_v9, %v1964_v7  ;;  %v1919_v13 = vpop.f32.mrb[14].mxu0  ;;  %v1967_v14 = vpop.f32.mrb[14].mxu1 }
 0x4d5   : > { %v1920_v15 = vpop.f32.mrb[15].mxu0  ;;  %v1968_v16 = vpop.f32.mrb[15].mxu1 }
 0x4d6   : > { %v1399_v17 = vadd.f32 %v1918_v10, %v2673_v24  ;;  %v1463_v18 = vadd.f32 %v1966_v11, %v2673_v24  ;;  %v1921_v19 = vadd.f32 %v1920_v15, %v1919_v13  ;;  %v1969_v20 = vadd.f32 %v1968_v16, %v1967_v14 }
 0x4d8   : > { %1507 = vst [vmem:[#allocation12 + $0x30] sm:$0xff] %v1399_v17  ;;  %1523 = vst [vmem:[#allocation12 + $0xb0] sm:$0xff] %v1463_v18  ;;  %v1402_v21 = vadd.f32 %v1921_v19, %v2673_v24  ;;  %v1466_v22 = vadd.f32 %v1969_v20, %v2673_v24 }
 0x4da   : > { %1508 = vst [vmem:[#allocation12 + $0x38] sm:$0xff] %v1402_v21  ;;  %1524 = vst [vmem:[#allocation12 + $0xb8] sm:$0xff] %v1466_v22  ;;  %v1922_v23 = vpop.f32.mrb[16].mxu0  ;;  %v1970_v25 = vpop.f32.mrb[16].mxu1 }
 0x4db   : > { %v1923_v26 = vpop.f32.mrb[17].mxu0  ;;  %v1971_v27 = vpop.f32.mrb[17].mxu1 }
 0x4dc   : > { %v1924_v28 = vadd.f32 %v1923_v26, %v1922_v23  ;;  %v1972_v29 = vadd.f32 %v1971_v27, %v1970_v25  ;;  %v1925_v32 = vpop.f32.mrb[18].mxu0  ;;  %v1973_v33 = vpop.f32.mrb[18].mxu1 }
 0x4dd   : > { %v1926_v34 = vpop.f32.mrb[19].mxu0  ;;  %v1974_v35 = vpop.f32.mrb[19].mxu1 }
 0x4de   : > { %v1407_v36 = vadd.f32 %v1924_v28, %v2673_v24  ;;  %v1471_v37 = vadd.f32 %v1972_v29, %v2673_v24  ;;  %v1927_v38 = vadd.f32 %v1926_v34, %v1925_v32  ;;  %v1975_v39 = vadd.f32 %v1974_v35, %v1973_v33 }
 0x4e0   : > { %1509 = vst [vmem:[#allocation12 + $0x40] sm:$0xff] %v1407_v36  ;;  %1525 = vst [vmem:[#allocation12 + $0xc0] sm:$0xff] %v1471_v37  ;;  %v1410_v40 = vadd.f32 %v1927_v38, %v2673_v24  ;;  %v1474_v41 = vadd.f32 %v1975_v39, %v2673_v24 }
 0x4e2   : > { %1510 = vst [vmem:[#allocation12 + $0x48] sm:$0xff] %v1410_v40  ;;  %1526 = vst [vmem:[#allocation12 + $0xc8] sm:$0xff] %v1474_v41  ;;  %v1928_v42 = vpop.f32.mrb[20].mxu0  ;;  %v1976_v43 = vpop.f32.mrb[20].mxu1 }
 0x4e3   : > { %v1929_v44 = vpop.f32.mrb[21].mxu0  ;;  %v1977_v45 = vpop.f32.mrb[21].mxu1 }
 0x4e4   : > { %v1930_v46 = vadd.f32 %v1929_v44, %v1928_v42  ;;  %v1978_v47 = vadd.f32 %v1977_v45, %v1976_v43  ;;  %v1931_v48 = vpop.f32.mrb[22].mxu0  ;;  %v1979_v49 = vpop.f32.mrb[22].mxu1 }
 0x4e5   : > { %v1932_v50 = vpop.f32.mrb[23].mxu0  ;;  %v1980_v51 = vpop.f32.mrb[23].mxu1 }
 0x4e6   : > { %v1415_v52 = vadd.f32 %v1930_v46, %v2673_v24  ;;  %v1479_v54 = vadd.f32 %v1978_v47, %v2673_v24  ;;  %v1933_v55 = vadd.f32 %v1932_v50, %v1931_v48  ;;  %v1981_v56 = vadd.f32 %v1980_v51, %v1979_v49 }
 0x4e8   : > { %1511 = vst [vmem:[#allocation12 + $0x50] sm:$0xff] %v1415_v52  ;;  %1527 = vst [vmem:[#allocation12 + $0xd0] sm:$0xff] %v1479_v54  ;;  %v1418_v57 = vadd.f32 %v1933_v55, %v2673_v24  ;;  %v1482_v58 = vadd.f32 %v1981_v56, %v2673_v24 }
 0x4ea   : > { %1512 = vst [vmem:[#allocation12 + $0x58] sm:$0xff] %v1418_v57  ;;  %1528 = vst [vmem:[#allocation12 + $0xd8] sm:$0xff] %v1482_v58  ;;  %v1934_v59 = vpop.f32.mrb[24].mxu0  ;;  %v1982_v60 = vpop.f32.mrb[24].mxu1 }
 0x4eb   : > { %v1935_v61 = vpop.f32.mrb[25].mxu0  ;;  %v1983_v62 = vpop.f32.mrb[25].mxu1 }
 0x4ec   : > { %v1936_v1 = vadd.f32 %v1935_v61, %v1934_v59  ;;  %v1984_v63 = vadd.f32 %v1983_v62, %v1982_v60  ;;  %v1937_v0 = vpop.f32.mrb[26].mxu0  ;;  %v1985_v2 = vpop.f32.mrb[26].mxu1 }
 0x4ed   : > { %v1938_v3 = vpop.f32.mrb[27].mxu0  ;;  %v1986_v31 = vpop.f32.mrb[27].mxu1 }
 0x4ee   : > { %v1423_v53 = vadd.f32 %v1936_v1, %v2673_v24  ;;  %v1487_v12 = vadd.f32 %v1984_v63, %v2673_v24  ;;  %v1939_v4 = vadd.f32 %v1938_v3, %v1937_v0  ;;  %v1987_v30 = vadd.f32 %v1986_v31, %v1985_v2 }
 0x4f0   : > { %1513 = vst [vmem:[#allocation12 + $0x60] sm:$0xff] %v1423_v53  ;;  %1529 = vst [vmem:[#allocation12 + $0xe0] sm:$0xff] %v1487_v12  ;;  %v1426_v5 = vadd.f32 %v1939_v4, %v2673_v24  ;;  %v1490_v6 = vadd.f32 %v1987_v30, %v2673_v24 }
 0x4f2   : > { %1514 = vst [vmem:[#allocation12 + $0x68] sm:$0xff] %v1426_v5  ;;  %1530 = vst [vmem:[#allocation12 + $0xe8] sm:$0xff] %v1490_v6  ;;  %v1940_v7 = vpop.f32.mrb[28].mxu0  ;;  %v1988_v8 = vpop.f32.mrb[28].mxu1 }
 0x4f3   : > { %v1941_v9 = vpop.f32.mrb[29].mxu0  ;;  %v1989_v10 = vpop.f32.mrb[29].mxu1 }
 0x4f4   : > { %v1942_v11 = vadd.f32 %v1941_v9, %v1940_v7  ;;  %v1990_v13 = vadd.f32 %v1989_v10, %v1988_v8  ;;  %v1943_v14 = vpop.f32.mrb[30].mxu0  ;;  %v1991_v15 = vpop.f32.mrb[30].mxu1 }
 0x4f5   : > { %v1944_v16 = vpop.f32.mrb[31].mxu0  ;;  %v1992_v17 = vpop.f32.mrb[31].mxu1 }
 0x4f6   : > { %v1431_v18 = vadd.f32 %v1942_v11, %v2673_v24  ;;  %v1495_v19 = vadd.f32 %v1990_v13, %v2673_v24  ;;  %v1945_v20 = vadd.f32 %v1944_v16, %v1943_v14  ;;  %v1993_v21 = vadd.f32 %v1992_v17, %v1991_v15 }
 0x4f8   : > { %1515 = vst [vmem:[#allocation12 + $0x70] sm:$0xff] %v1431_v18  ;;  %1531 = vst [vmem:[#allocation12 + $0xf0] sm:$0xff] %v1495_v19  ;;  %v1434_v22 = vadd.f32 %v1945_v20, %v2673_v24  ;;  %v1498_v23 = vadd.f32 %v1993_v21, %v2673_v24 }
 0x4fa   : > { %1516 = vst [vmem:[#allocation12 + $0x78] sm:$0xff] %v1434_v22  ;;  %1532 = vst [vmem:[#allocation12 + $0xf8] sm:$0xff] %v1498_v23 }
 0x4fb PF: > { %p2709_p13 = scmp.eq.s32.totalorder %s1663_s24, 2  ;;  %s2426_s18 = smov [#allocation12]  }
 0x4fc   : > { %s1549_s19 = sshll.u32 %s2426_s18, 4  ;;  %s1550_s19 = int_to_ptr.vmem [resolvable:$true] %s1549_s19 }
 0x4fd   : > { %s2347_s20 = scalar_lea.vmem %s1550_s19, 4096  ;;  %s2353_s27 = scalar_lea.vmem %s1550_s19, 8192 }
 0x4fe   : > { %p2348_p0 = scmp.ne.s32.totalorder %s1550_s19, %s2347_s20  ;;  %p2354_p5 = scmp.lt.s32.totalorder %s1550_s19, %s1550_s19 }
 0x4ff   : > { %p2355_p3 = scmp.lt.s32.totalorder %s2353_s27, %s2347_s20 }
 0x500   : > { %p2349_p1 = pnand %p2348_p0, %p2709_p13 }
 0x501   : > { %p2356_p4 = por %p2355_p3, %p2354_p5 }
 0x502   : > { %p2350_p2 = pneg %p2349_p1 }
 0x504   : > { %p2357_p8 = pnand %p2356_p4, %p2350_p2 }
 0x506   : > { %2360 = shalt.err (!%p2357_p8)
}
 0x507   : > { %s2361_s8 = scalar_lea.hbm %s2749_s6, 4096 }
 0x508   : > { %p2362_p6 = scmp.ne.s32.totalorder %s2749_s6, %s2361_s8  ;;  %p2367_p10 = scmp.lt.u32.totalorder %s2361_s8, %s2749_s6 }
 0x50a   : > { %p2363_p7 = pnand %p2362_p6, %p2709_p13 }
 0x50c   : > { %p2364_p9 = pneg %p2363_p7 }
 0x50e   : > { %p2369_p11 = pnand %p2367_p10, %p2364_p9 }
 0x510   : > { %2372 = shalt.err (!%p2369_p11)
}
 0x511   : > { %s2427_s13 = smov 128   ;;  %s2428_s9 = smov 8  }
 0x512   : > { %2163 = dma.vmem_to_hbm [thread:$0]  (%p2709_p13), %s1550_s19, 4096, %s2749_s6, [#allocation8], %s2427_s13, %s2427_s13, %s2428_s9  }
 0x513 PF: > { %p2189_p12 = scmp.ge.s32.totalorder %s2411_s23, 2  ;;  %p2190_p0 = scmp.eq.s32.totalorder %s1664_s25, 2 }
 0x515   : > { %p2178_p1 = pnand %p2190_p0, %p2189_p12 }
 0x517   : > { %2398 = dma.done.wait (!%p2178_p1), [#allocation8], 4096  }
 0x518   : > { %2400 = vsyncadd (!%p2178_p1), [#allocation8], 4294963200  ;;  %s23_s23 = sadd.s32 1, %s2411_s23   ;;  %s2762_s21 = smov %s2407_s22 }
 0x519   : > { %p20_p2 = scmp.ge.s32.totalorder %s23_s23, 5   ;;  %s2763_s22 = smov %s2765_s26 }
 0x51b   :  { %22 = sbr.rel (!%p20_p2) target bundleno = 6 (0x6), region = 125 }
 0x522   :  { %1570 = vsyncpa [#allocation7], 1 }
 0x523   :  { %1572 = vsyncpa [#allocation7 + $0x1], 1 }
 0x524   :  { %1573 = vsyncpa [#allocation10], 1 }
 0x525   :  { %1574 = vsyncpa [#allocation8], 1 }
 0x526   :  { %1576 = vsyncpa [#allocation8 + $0x1], 1 }
 0x527   :  { %1577 = vsyncmov [#allocation5] }
 0x52a   :  { %s1578_s25 = vpop.sfrf %1577 }
 0x52b   :  { %p1719_p13 = scmp.ne.s32.totalorder %s1578_s25, 0 }
 0x52d   :  { %1582 = shalt.err (%p1719_p13)  }

</bundles_post_ra>
